<compile_context>
chip_gen: v6e
topology: v6e:2x2x1
jax: 0.10.0
libtpu: 0.0.40
codegen_flags: <defaults>
</compile_context>

<pallas_src>
import functools

import jax
import jax.numpy as jnp
from jax import lax
from jax.experimental import pallas as pl
from jax.experimental.pallas import tpu as pltpu


_SQRT12 = 3.4641016151377544     # 1 / RMS of uniform(-0.5, 0.5) noise


def _build_fir_matrix(ir):
    """Constant (256, 128) Toeplitz tap matrix W, W[i, j] = ir[128 + j - i].

    For output column group g >= 1:
        y[:, g*128:(g+1)*128] = x[:, (g-1)*128:(g+1)*128] @ W
    and for g == 0 (zero initial condition):
        y[:, 0:128]           = x[:, 0:128] @ W[128:, :]
    which equals the causal FIR  y[t] = sum_k ir[k] * x[t - k]  with x[t<0] = 0.
    Contraction dim 256 matches the v6e/v7x MXU; v5e simply runs two passes.
    """
    k = int(ir.shape[0])
    i = jnp.arange(256, dtype=jnp.int32)[:, None]
    j = jnp.arange(128, dtype=jnp.int32)[None, :]
    tap = 128 + j - i
    valid = (tap >= 0) & (tap < k)
    return jnp.where(valid, ir[jnp.clip(tap, 0, k - 1)], 0.0).astype(jnp.float32)


def _time_augment_kernel(seed_ref, w_ref, x_ref, o_ref, *,
                         gain, shift_samples, snr_amp):
    rows, t = x_ref.shape
    x = x_ref[...].astype(jnp.float32)

    # --- Per-row statistics of the raw block (shift and scalar factors do not
    #     change them, so compute them once up front; reductions run on the XLU).
    xsq = x * x
    maxsq = jnp.max(xsq, axis=-1, keepdims=True)                     # peak^2
    meansq = jnp.sum(xsq, axis=-1, keepdims=True) * jnp.float32(1.0 / t)

    # --- Shift: circular roll along the time (lane) axis.
    if shift_samples:
        x = pltpu.roll(x, shift=shift_samples, axis=1)

    # --- Gain + PolarityInversion + PeakNormalization("only_too_loud_sounds")
    #     fused into one per-row scalar.  rsqrt (EUP) replaces sqrt+divide.
    g2max = jnp.float32(gain * gain) * maxsq                          # (gain*peak)^2
    inv_gpeak = lax.rsqrt(jnp.maximum(g2max, jnp.float32(1e-30)))     # 1/(gain*peak)
    norm = jnp.where(g2max > 1.0, inv_gpeak, jnp.float32(1.0))        # (rows, 1)
    x = x * (jnp.float32(-gain) * norm)

    # --- AddColoredNoise (white) at a fixed SNR.  Portable integer-hash PRNG
    #     keyed on the ABSOLUTE element index, so the noise is independent of
    #     the row tiling / grid.  The 2^-32 scale, sqrt(12) and the SNR factor
    #     are all folded into the per-row noise_gain (single multiply on the
    #     noise path besides the int->float convert).
    row0 = pl.program_id(0) * rows
    r = lax.broadcasted_iota(jnp.int32, (rows, t), 0) + row0
    c = lax.broadcasted_iota(jnp.int32, (rows, t), 1)
    h = (r * jnp.int32(t) + c) ^ seed_ref[0]
    h = h * jnp.int32(-1640531527)            # 0x9E3779B9
    h = h ^ jnp.right_shift(h, 15)
    h = h * jnp.int32(-1028477387)            # 0xC2B2AE35
    h = h ^ jnp.right_shift(h, 13)
    h = h * jnp.int32(-2048144777)            # 0x85EBCA77  (end on a multiply)
    sig_rms = jnp.float32(gain) * norm * jnp.sqrt(meansq)             # (rows, 1)
    noise_gain = sig_rms * jnp.float32(snr_amp * _SQRT12 * 2.0 ** -32)
    x = x + h.astype(jnp.float32) * noise_gain

    # --- ApplyImpulseResponse: causal FIR on the MXU (banded Toeplitz matmul).
    #     Each group stores straight to o_ref, so no temporaries carry across
    #     iterations (bounded live ranges); all slices are 128-lane aligned.
    w = w_ref[...]                                                    # (256, 128)
    dt = o_ref.dtype
    o_ref[:, 0:128] = jnp.dot(x[:, 0:128], w[128:, :],
                              preferred_element_type=jnp.float32).astype(dt)
    for g in range(1, t // 128):
        lo = (g - 1) * 128
        o_ref[:, g * 128:(g + 1) * 128] = jnp.dot(
            x[:, lo:lo + 256], w,
            preferred_element_type=jnp.float32).astype(dt)


def _pick_rows_tile(n_rows, t):
    """~2 MiB f32 input blocks (sublane multiple of 8).  When there are enough
    rows, keep >= 4 grid steps so a v7x megacore gets >= 2 steps per TensorCore
    and DMA/compute overlap survives the parallel split."""
    n8 = ((n_rows + 7) // 8) * 8
    rt = max(8, ((2 << 20) // (t * 4)) // 8 * 8)
    rt = min(rt, n8)
    if n8 >= 32:
        rt = min(rt, max(8, (n8 // 4) // 8 * 8))
    return rt


def time_augment(x, ir, seed, *, gain_db=3.0, shift_frac=0.1, snr_db=20.0):
    """x: (B, C, T) float32 waveform. Returns augmented waveform, same shape."""
    B, C, T = x.shape
    assert T % 128 == 0 and T >= 128, "time axis must be a multiple of 128 lanes"
    n_taps = int(ir.shape[0])
    assert 1 <= n_taps <= 128, "IR taps must fit in one 128-lane column group"

    N = B * C
    x2 = x.reshape(N, T)
    w = _build_fir_matrix(ir)                       # constant (256, 128) tap matrix

    rows_tile = _pick_rows_tile(N, T)
    grid = (pl.cdiv(N, rows_tile),)                 # ragged last block is fine:
                                                    # all math is per-row.
    kernel = functools.partial(
        _time_augment_kernel,
        gain=float(10.0 ** (gain_db / 20.0)),
        shift_samples=int(round(shift_frac * T)) % T,
        snr_amp=float(10.0 ** (-snr_db / 20.0)),
    )

    out = pl.pallas_call(
        kernel,
        out_shape=jax.ShapeDtypeStruct((N, T), x.dtype),
        grid_spec=pltpu.PrefetchScalarGridSpec(
            num_scalar_prefetch=0,
            grid=grid,
            in_specs=[
                pl.BlockSpec(memory_space=pltpu.SMEM),            # seed (1,) int32
                pl.BlockSpec((256, 128), lambda i: (0, 0)),       # FIR tap matrix
                pl.BlockSpec((rows_tile, T), lambda i: (i, 0)),   # waveform rows
            ],
            out_specs=pl.BlockSpec((rows_tile, T), lambda i: (i, 0)),
        ),
        compiler_params=pltpu.CompilerParams(
            dimension_semantics=("parallel",),
            # ~2 MiB in-block: 2x in + 2x out buffers + intermediates stay well
            # under v7x's 64 MiB physical VMEM; headroom lets v5e/v6e tiles grow.
            vmem_limit_bytes=64 * 1024 * 1024,
        ),
        cost_estimate=pl.CostEstimate(
            flops=N * T * (2 * 256 + 32),
            transcendentals=2 * N,
            bytes_accessed=8 * N * T,
        ),
    )(seed, w, x2)
    return out.reshape(B, C, T)


if __name__ == "__main__":
    key = jax.random.PRNGKey(0)
    B, C, T = 4, 4, 1024          # 16 waveform rows, 8 FIR column groups
    K = 16                        # synthetic impulse-response taps

    k_x, _ = jax.random.split(key)
    x = jax.random.normal(k_x, (B, C, T), dtype=jnp.float32) * 0.7

    # Deterministic synthetic IR (decaying exponential, L1-normalized).
    taps = jnp.exp(-jnp.arange(K, dtype=jnp.float32) / 4.0)
    ir = (taps / jnp.sum(taps)).astype(jnp.float32)

    seed = jnp.array([1234], dtype=jnp.int32)

    y = time_augment(x, ir, seed)
    jax.block_until_ready(y)
    assert y.shape == x.shape and y.dtype == x.dtype
    assert bool(jnp.all(jnp.isfinite(y)))
    print("KERNEL_OK")
</pallas_src>

<mosaic_0001>
module attributes {stable_mosaic.version = 11 : i64} {
  func.func @_time_augment_kernel(%arg0: i32, %arg1: memref<1xi32, #tpu.memory_space<smem>>, %arg2: memref<256x128xf32, #tpu.memory_space<vmem>>, %arg3: memref<16x1024xf32, #tpu.memory_space<vmem>>, %arg4: memref<16x1024xf32, #tpu.memory_space<vmem>>) attributes {dimension_semantics = [#tpu.dimension_semantics<parallel>], iteration_bounds = array<i64: 1>, scalar_prefetch = 0 : i64, scratch_operands = 0 : i64, tpu.core_type = #tpu.core_type<tc>, window_params = [{transform_indices = @transform_0, window_bounds = array<i64: 1>}, {pipeline_mode = #tpu.pipeline_mode<synchronous>, transform_indices = @transform_1, window_bounds = array<i64: 256, 128>}, {transform_indices = @transform_2, window_bounds = array<i64: 16, 1024>}, {transform_indices = @transform_3, window_bounds = array<i64: 16, 1024>}]} {
    %c0 = arith.constant 0 : index
    %c0_0 = arith.constant 0 : index
    %0 = vector.load %arg3[%c0, %c0_0] : memref<16x1024xf32, #tpu.memory_space<vmem>>, vector<16x1024xf32>
    %1 = arith.mulf %0, %0 : vector<16x1024xf32>
    %cst = arith.constant dense<0xFF800000> : vector<16xf32>
    %2 = vector.multi_reduction <maximumf>, %1, %cst [1] : vector<16x1024xf32> to vector<16xf32>
    %3 = vector.shape_cast %2 : vector<16xf32> to vector<16x1xf32>
    %cst_1 = arith.constant dense<0.000000e+00> : vector<16xf32>
    %4 = vector.multi_reduction <add>, %1, %cst_1 [1] : vector<16x1024xf32> to vector<16xf32>
    %5 = vector.shape_cast %4 : vector<16xf32> to vector<16x1xf32>
    %cst_2 = arith.constant 9.765625E-4 : f32
    %6 = vector.broadcast %cst_2 : f32 to vector<16x1xf32>
    %7 = arith.mulf %5, %6 : vector<16x1xf32>
    %c102_i32 = arith.constant 102 : i32
    %8 = tpu.dynamic_rotate %0 by %c102_i32 dim 1 : vector<16x1024xf32>, i32 -> vector<16x1024xf32>
    %cst_3 = arith.constant 1.99526227 : f32
    %9 = vector.broadcast %cst_3 : f32 to vector<16x1xf32>
    %10 = arith.mulf %9, %3 : vector<16x1xf32>
    %cst_4 = arith.constant 1.000000e-30 : f32
    %11 = vector.broadcast %cst_4 : f32 to vector<16x1xf32>
    %12 = arith.maximumf %10, %11 : vector<16x1xf32>
    %13 = math.rsqrt %12 : vector<16x1xf32>
    %cst_5 = arith.constant 1.000000e+00 : f32
    %14 = vector.broadcast %cst_5 : f32 to vector<16x1xf32>
    %15 = arith.cmpf ogt, %10, %14 : vector<16x1xf32>
    %cst_6 = arith.constant 1.000000e+00 : f32
    %16 = vector.broadcast %cst_6 : f32 to vector<16x1xf32>
    %17 = arith.select %15, %13, %16 : vector<16x1xi1>, vector<16x1xf32>
    %cst_7 = arith.constant -1.41253757 : f32
    %18 = vector.broadcast %cst_7 : f32 to vector<16x1xf32>
    %19 = arith.mulf %18, %17 : vector<16x1xf32>
    %20 = vector.broadcast %19 : vector<16x1xf32> to vector<16x1024xf32>
    %21 = arith.mulf %8, %20 : vector<16x1024xf32>
    %c16_i32 = arith.constant 16 : i32
    %22 = arith.muli %arg0, %c16_i32 : i32
    %23 = tpu.iota {dimensions = array<i32: 0>} : vector<16x1024xi32>
    %24 = vector.broadcast %22 : i32 to vector<16x1024xi32>
    %25 = arith.addi %23, %24 : vector<16x1024xi32>
    %26 = tpu.iota {dimensions = array<i32: 1>} : vector<16x1024xi32>
    %c1024_i32 = arith.constant 1024 : i32
    %27 = vector.broadcast %c1024_i32 : i32 to vector<16x1024xi32>
    %28 = arith.muli %25, %27 : vector<16x1024xi32>
    %29 = arith.addi %28, %26 : vector<16x1024xi32>
    %c0_8 = arith.constant 0 : index
    %30 = memref.load %arg1[%c0_8] : memref<1xi32, #tpu.memory_space<smem>>
    %31 = vector.broadcast %30 : i32 to vector<16x1024xi32>
    %32 = arith.xori %29, %31 : vector<16x1024xi32>
    %c-1640531527_i32 = arith.constant -1640531527 : i32
    %33 = vector.broadcast %c-1640531527_i32 : i32 to vector<16x1024xi32>
    %34 = arith.muli %32, %33 : vector<16x1024xi32>
    %c15_i32 = arith.constant 15 : i32
    %35 = vector.broadcast %c15_i32 : i32 to vector<16x1024xi32>
    %36 = arith.shrsi %34, %35 : vector<16x1024xi32>
    %37 = arith.xori %34, %36 : vector<16x1024xi32>
    %c-1028477387_i32 = arith.constant -1028477387 : i32
    %38 = vector.broadcast %c-1028477387_i32 : i32 to vector<16x1024xi32>
    %39 = arith.muli %37, %38 : vector<16x1024xi32>
    %c13_i32 = arith.constant 13 : i32
    %40 = vector.broadcast %c13_i32 : i32 to vector<16x1024xi32>
    %41 = arith.shrsi %39, %40 : vector<16x1024xi32>
    %42 = arith.xori %39, %41 : vector<16x1024xi32>
    %c-2048144777_i32 = arith.constant -2048144777 : i32
    %43 = vector.broadcast %c-2048144777_i32 : i32 to vector<16x1024xi32>
    %44 = arith.muli %42, %43 : vector<16x1024xi32>
    %cst_9 = arith.constant 1.41253757 : f32
    %45 = vector.broadcast %cst_9 : f32 to vector<16x1xf32>
    %46 = arith.mulf %45, %17 : vector<16x1xf32>
    %47 = math.sqrt %7 : vector<16x1xf32>
    %48 = arith.mulf %46, %47 : vector<16x1xf32>
    %cst_10 = arith.constant 8.06548994E-11 : f32
    %49 = vector.broadcast %cst_10 : f32 to vector<16x1xf32>
    %50 = arith.mulf %48, %49 : vector<16x1xf32>
    %51 = arith.sitofp %44 : vector<16x1024xi32> to vector<16x1024xf32>
    %52 = vector.broadcast %50 : vector<16x1xf32> to vector<16x1024xf32>
    %53 = arith.mulf %51, %52 : vector<16x1024xf32>
    %54 = arith.addf %21, %53 : vector<16x1024xf32>
    %c0_11 = arith.constant 0 : index
    %c0_12 = arith.constant 0 : index
    %55 = vector.load %arg2[%c0_11, %c0_12] : memref<256x128xf32, #tpu.memory_space<vmem>>, vector<256x128xf32>
    %56 = vector.extract_strided_slice %54 {offsets = [0, 0], sizes = [16, 128], strides = [1, 1]} : vector<16x1024xf32> to vector<16x128xf32>
    %57 = vector.extract_strided_slice %55 {offsets = [128, 0], sizes = [128, 128], strides = [1, 1]} : vector<256x128xf32> to vector<128x128xf32>
    %cst_13 = arith.constant dense<0.000000e+00> : vector<16x128xf32>
    %58 = tpu.matmul %56, %57, %cst_13 {dimension_numbers = #tpu.dot_dimension_numbers<[1], [0], [0], [1], [0, 0, 1, 1], [], []>} : vector<16x128xf32>, vector<128x128xf32>, vector<16x128xf32> -> vector<16x128xf32>
    %c0_14 = arith.constant 0 : index
    %c0_15 = arith.constant 0 : index
    %59 = vector.load %arg4[%c0_14, %c0_15] : memref<16x1024xf32, #tpu.memory_space<vmem>>, vector<16x128xf32>
    tpu.vector_store %arg4[%c0_14, %c0_15], %58 {strides = array<i32>} : memref<16x1024xf32, #tpu.memory_space<vmem>>, vector<16x128xf32>,
    %60 = vector.extract_strided_slice %54 {offsets = [0, 0], sizes = [16, 256], strides = [1, 1]} : vector<16x1024xf32> to vector<16x256xf32>
    %cst_16 = arith.constant dense<0.000000e+00> : vector<16x128xf32>
    %61 = tpu.matmul %60, %55, %cst_16 {dimension_numbers = #tpu.dot_dimension_numbers<[1], [0], [0], [1], [0, 0, 1, 1], [], []>} : vector<16x256xf32>, vector<256x128xf32>, vector<16x128xf32> -> vector<16x128xf32>
    %c0_17 = arith.constant 0 : index
    %c128 = arith.constant 128 : index
    %62 = vector.load %arg4[%c0_17, %c128] : memref<16x1024xf32, #tpu.memory_space<vmem>>, vector<16x128xf32>
    tpu.vector_store %arg4[%c0_17, %c128], %61 {strides = array<i32>} : memref<16x1024xf32, #tpu.memory_space<vmem>>, vector<16x128xf32>,
    %63 = vector.extract_strided_slice %54 {offsets = [0, 128], sizes = [16, 256], strides = [1, 1]} : vector<16x1024xf32> to vector<16x256xf32>
    %cst_18 = arith.constant dense<0.000000e+00> : vector<16x128xf32>
    %64 = tpu.matmul %63, %55, %cst_18 {dimension_numbers = #tpu.dot_dimension_numbers<[1], [0], [0], [1], [0, 0, 1, 1], [], []>} : vector<16x256xf32>, vector<256x128xf32>, vector<16x128xf32> -> vector<16x128xf32>
    %c0_19 = arith.constant 0 : index
    %c256 = arith.constant 256 : index
    %65 = vector.load %arg4[%c0_19, %c256] : memref<16x1024xf32, #tpu.memory_space<vmem>>, vector<16x128xf32>
    tpu.vector_store %arg4[%c0_19, %c256], %64 {strides = array<i32>} : memref<16x1024xf32, #tpu.memory_space<vmem>>, vector<16x128xf32>,
    %66 = vector.extract_strided_slice %54 {offsets = [0, 256], sizes = [16, 256], strides = [1, 1]} : vector<16x1024xf32> to vector<16x256xf32>
    %cst_20 = arith.constant dense<0.000000e+00> : vector<16x128xf32>
    %67 = tpu.matmul %66, %55, %cst_20 {dimension_numbers = #tpu.dot_dimension_numbers<[1], [0], [0], [1], [0, 0, 1, 1], [], []>} : vector<16x256xf32>, vector<256x128xf32>, vector<16x128xf32> -> vector<16x128xf32>
    %c0_21 = arith.constant 0 : index
    %c384 = arith.constant 384 : index
    %68 = vector.load %arg4[%c0_21, %c384] : memref<16x1024xf32, #tpu.memory_space<vmem>>, vector<16x128xf32>
    tpu.vector_store %arg4[%c0_21, %c384], %67 {strides = array<i32>} : memref<16x1024xf32, #tpu.memory_space<vmem>>, vector<16x128xf32>,
    %69 = vector.extract_strided_slice %54 {offsets = [0, 384], sizes = [16, 256], strides = [1, 1]} : vector<16x1024xf32> to vector<16x256xf32>
    %cst_22 = arith.constant dense<0.000000e+00> : vector<16x128xf32>
    %70 = tpu.matmul %69, %55, %cst_22 {dimension_numbers = #tpu.dot_dimension_numbers<[1], [0], [0], [1], [0, 0, 1, 1], [], []>} : vector<16x256xf32>, vector<256x128xf32>, vector<16x128xf32> -> vector<16x128xf32>
    %c0_23 = arith.constant 0 : index
    %c512 = arith.constant 512 : index
    %71 = vector.load %arg4[%c0_23, %c512] : memref<16x1024xf32, #tpu.memory_space<vmem>>, vector<16x128xf32>
    tpu.vector_store %arg4[%c0_23, %c512], %70 {strides = array<i32>} : memref<16x1024xf32, #tpu.memory_space<vmem>>, vector<16x128xf32>,
    %72 = vector.extract_strided_slice %54 {offsets = [0, 512], sizes = [16, 256], strides = [1, 1]} : vector<16x1024xf32> to vector<16x256xf32>
    %cst_24 = arith.constant dense<0.000000e+00> : vector<16x128xf32>
    %73 = tpu.matmul %72, %55, %cst_24 {dimension_numbers = #tpu.dot_dimension_numbers<[1], [0], [0], [1], [0, 0, 1, 1], [], []>} : vector<16x256xf32>, vector<256x128xf32>, vector<16x128xf32> -> vector<16x128xf32>
    %c0_25 = arith.constant 0 : index
    %c640 = arith.constant 640 : index
    %74 = vector.load %arg4[%c0_25, %c640] : memref<16x1024xf32, #tpu.memory_space<vmem>>, vector<16x128xf32>
    tpu.vector_store %arg4[%c0_25, %c640], %73 {strides = array<i32>} : memref<16x1024xf32, #tpu.memory_space<vmem>>, vector<16x128xf32>,
    %75 = vector.extract_strided_slice %54 {offsets = [0, 640], sizes = [16, 256], strides = [1, 1]} : vector<16x1024xf32> to vector<16x256xf32>
    %cst_26 = arith.constant dense<0.000000e+00> : vector<16x128xf32>
    %76 = tpu.matmul %75, %55, %cst_26 {dimension_numbers = #tpu.dot_dimension_numbers<[1], [0], [0], [1], [0, 0, 1, 1], [], []>} : vector<16x256xf32>, vector<256x128xf32>, vector<16x128xf32> -> vector<16x128xf32>
    %c0_27 = arith.constant 0 : index
    %c768 = arith.constant 768 : index
    %77 = vector.load %arg4[%c0_27, %c768] : memref<16x1024xf32, #tpu.memory_space<vmem>>, vector<16x128xf32>
    tpu.vector_store %arg4[%c0_27, %c768], %76 {strides = array<i32>} : memref<16x1024xf32, #tpu.memory_space<vmem>>, vector<16x128xf32>,
    %78 = vector.extract_strided_slice %54 {offsets = [0, 768], sizes = [16, 256], strides = [1, 1]} : vector<16x1024xf32> to vector<16x256xf32>
    %cst_28 = arith.constant dense<0.000000e+00> : vector<16x128xf32>
    %79 = tpu.matmul %78, %55, %cst_28 {dimension_numbers = #tpu.dot_dimension_numbers<[1], [0], [0], [1], [0, 0, 1, 1], [], []>} : vector<16x256xf32>, vector<256x128xf32>, vector<16x128xf32> -> vector<16x128xf32>
    %c0_29 = arith.constant 0 : index
    %c896 = arith.constant 896 : index
    %80 = vector.load %arg4[%c0_29, %c896] : memref<16x1024xf32, #tpu.memory_space<vmem>>, vector<16x128xf32>
    tpu.vector_store %arg4[%c0_29, %c896], %79 {strides = array<i32>} : memref<16x1024xf32, #tpu.memory_space<vmem>>, vector<16x128xf32>,
    return
  }
  func.func @transform_0(%arg0: i32) -> i32 {
    %c0_i32 = arith.constant 0 : i32
    %c0_i32_0 = arith.constant 0 : i32
    return %c0_i32 : i32
  }
  func.func @transform_1(%arg0: i32) -> (i32, i32) {
    %c0_i32 = arith.constant 0 : i32
    %c0_i32_0 = arith.constant 0 : i32
    %c0_i32_1 = arith.constant 0 : i32
    return %c0_i32, %c0_i32_0 : i32, i32
  }
  func.func @transform_2(%arg0: i32) -> (i32, i32) {
    %c0_i32 = arith.constant 0 : i32
    %c0_i32_0 = arith.constant 0 : i32
    return %arg0, %c0_i32 : i32, i32
  }
  func.func @transform_3(%arg0: i32) -> (i32, i32) {
    %c0_i32 = arith.constant 0 : i32
    %c0_i32_0 = arith.constant 0 : i32
    return %arg0, %c0_i32 : i32, i32
  }
}

</mosaic_0001>

<bundles_post_ra>
// kernel: tpu_custom_call.1
= control target key start
LH: loop header
LB: loop body
LE: loop exit
PB: predicated region body
PF: predicated region fallthrough
CT: control target
= control target key end

     0   :  { %9 = vsyncpa [#allocation4], 0  ;;  %s2209_s0 = inlined_call_operand.<no memory space> [shape: s32[1], index: 0, kind: input, shape index: {}]   ;;  %s2210_s1 = inlined_call_operand.hbm [shape: f32[256,128], index: 1, kind: input, shape index: {}]   ;;  %s2211_s2 = inlined_call_operand.hbm [shape: f32[16,1024], index: 2, kind: input, shape index: {}]   ;;  %s2212_s3 = inlined_call_operand.hbm [shape: f32[16,1024], index: 3, kind: output, shape index: {}]  }
   0x1   :  { %10 = vsyncpa [#allocation7], 0 }
   0x2   :  { %11 = vsyncpa [#allocation5], 0  ;;  %s1522_s12 = smov [#allocation3]  }
   0x3   :  { %s19_s13 = sshll.u32 %s1522_s12, 4  ;;  %s20_s13 = int_to_ptr.vmem [resolvable:$true] %s19_s13 }
   0x4   :  { %s1464_s14 = scalar_lea.vmem %s20_s13, 4096  ;;  %p1469_p1 = scmp.lt.s32.totalorder %s20_s13, %s20_s13 }
   0x5   :  { %p1465_p0 = scmp.ne.s32.totalorder %s20_s13, %s1464_s14  ;;  %p1470_p2 = scmp.lt.s32.totalorder %s1464_s14, %s1464_s14 }
   0x7   :  { %p1471_p3 = por %p1470_p2, %p1469_p1 }
   0x9   :  { %p1472_p4 = pnand %p1471_p3, %p1465_p0 }
   0xb   :  { %1475 = shalt.err (!%p1472_p4)
}
   0xc   :  { %s1523_s15 = smov 128   ;;  %s1524_s16 = smov 8  }
   0xd   :  { %25 = dma.hbm_to_vmem [thread:$0]  %s2210_s1, 4096, %s20_s13, [#allocation4], %s1523_s15, %s1523_s15, %s1524_s16  }
   0xe   :  { %s1525_s19 = smov [#allocation6]  }
   0xf   :  { %s31_s20 = sshll.u32 %s1525_s19, 4  ;;  %s32_s20 = int_to_ptr.vmem [resolvable:$true] %s31_s20 }
  0x10   :  { %s1484_s21 = scalar_lea.vmem %s32_s20, 2048  ;;  %p1489_p6 = scmp.lt.s32.totalorder %s32_s20, %s32_s20 }
  0x11   :  { %p1485_p5 = scmp.ne.s32.totalorder %s32_s20, %s1484_s21  ;;  %p1490_p7 = scmp.lt.s32.totalorder %s1484_s21, %s1484_s21 }
  0x13   :  { %p1491_p8 = por %p1490_p7, %p1489_p6 }
  0x15   :  { %p1492_p9 = pnand %p1491_p8, %p1485_p5 }
  0x17   :  { %1495 = shalt.err (!%p1492_p9)
}
  0x18   :  { %s1526_s22 = smov 1024   ;;  %s1527_s23 = smov 64  }
  0x19   :  { %37 = dma.hbm_to_vmem [thread:$0]  %s2211_s2, 2048, %s32_s20, [#allocation7], %s1526_s22, %s1526_s22, %s1527_s23  }
  0x1a   :  { %1516 = dma.done.wait [#allocation4], 4096  }
  0x1b   :  { %1517 = vsyncadd [#allocation4], 4294963200 }
  0x1c   :  { %1518 = dma.done.wait [#allocation7], 2048  }
  0x1d   :  { %1519 = vsyncadd [#allocation7], 4294965248  ;;  %v45_v0 = vld [vmem:[#allocation6 + $0x8] sm:$0xff]  ;;  %v1559_v1 = vld [vmem:[#allocation6 + $0x10] sm:$0xff]  ;;  %s1528_s1 = smov 102  }
  0x1e   :  { %v1561_v2 = vld [vmem:[#allocation6 + $0x18] sm:$0xff]  ;;  %v62_v3 = vmul.f32 %v1559_v1, %v1559_v1  ;;  %118 = vrot.lane.b32.xlu1 %v45_v0, %s1528_s1  ;;  %v44_v5 = vld [vmem:[#allocation6] sm:$0xff]  ;;  %v61_v6 = vmul.f32 %v45_v0, %v45_v0  ;;  %v1570_v8 = vld [vmem:[#allocation6 + $0x28] sm:$0xff] }
  0x1f   :  { %v63_v4 = vmul.f32 %v1561_v2, %v1561_v2  ;;  %v1568_v7 = vld [vmem:[#allocation6 + $0x20] sm:$0xff]  ;;  %v60_v9 = vmul.f32 %v44_v5, %v44_v5  ;;  %v1572_v10 = vld [vmem:[#allocation6 + $0x30] sm:$0xff]  ;;  %v1574_v11 = vld [vmem:[#allocation6 + $0x38] sm:$0xff]  ;;  %v65_v13 = vmul.f32 %v1570_v8, %v1570_v8 }
  0x20   :  { %v64_v12 = vmul.f32 %v1568_v7, %v1568_v7  ;;  %v1580_v14 = vld [vmem:[#allocation6 + $0x40] sm:$0xff]  ;;  %v67_v16 = vmul.f32 %v1574_v11, %v1574_v11  ;;  %v1584_v17 = vld [vmem:[#allocation6 + $0x48] sm:$0xff]  ;;  %v1586_v18 = vld [vmem:[#allocation6 + $0x50] sm:$0xff]  ;;  %v66_v21 = vmul.f32 %v1572_v10, %v1572_v10 }
  0x21   :  { %v77_v15 = vmax.f32 %v61_v6, %v63_v4  ;;  %v1588_v19 = vld [vmem:[#allocation6 + $0x58] sm:$0xff]  ;;  %v68_v20 = vmul.f32 %v1580_v14, %v1580_v14  ;;  %v76_v22 = vmax.f32 %v60_v9, %v62_v3  ;;  %v1594_v23 = vld [vmem:[#allocation6 + $0x60] sm:$0xff]  ;;  %v1596_v24 = vld [vmem:[#allocation6 + $0x68] sm:$0xff]  ;;  %v69_v26 = vmul.f32 %v1584_v17, %v1584_v17 }
  0x22   :  { %v1598_v25 = vld [vmem:[#allocation6 + $0x70] sm:$0xff]  ;;  %v70_v27 = vmul.f32 %v1586_v18, %v1586_v18  ;;  %v59_v29 = vld [vmem:[#allocation6 + $0x78] sm:$0xff]  ;;  %v71_v30 = vmul.f32 %v1588_v19, %v1588_v19  ;;  %v72_v31 = vmul.f32 %v1594_v23, %v1594_v23  ;;  %v73_v32 = vmul.f32 %v1596_v24, %v1596_v24  ;;  %v1630_v0 = vld [vmem:[#allocation3 + $0xe8] sm:$0xff] }
  0x23   :  { %v79_v28 = vmax.f32 %v77_v15, %v65_v13  ;;  %v78_v33 = vmax.f32 %v76_v22, %v64_v12  ;;  %v74_v34 = vmul.f32 %v1598_v25, %v1598_v25  ;;  %v75_v36 = vmul.f32 %v59_v29, %v59_v29  ;;  %v1614_v60 = vld [vmem:[#allocation3 + $0xf8] sm:$0xff]  ;;  %v1621_v62 = vld [vmem:[#allocation3 + $0xf0] sm:$0xff]  ;;  %v1669_v15 = vld [vmem:[#allocation3 + $0x48] sm:$0xff] }
  0x24   :  { %v85_v37 = vmax.f32 %v68_v20, %v70_v27  ;;  %v86_v38 = vmax.f32 %v69_v26, %v71_v30  ;;  %v94_v40 = vadd.f32 %v61_v6, %v60_v9  ;;  %v103_v48 = vadd.f32 %v69_v26, %v68_v20  ;;  %2253 = vst [vmem:[#allocation12_spill] sm:$0xff] %v1614_v60  ;;  %v1617_v61 = vld [vmem:[#allocation3 + $0x78] sm:$0xff]  ;;  %v1623_v63 = vld [vmem:[#allocation3 + $0x70] sm:$0xff]  ;;  %v1703_v26 = vld [vmem:[#allocation3 + $0xa8] sm:$0xff] }
  0x25   :  { %v81_v35 = vmax.f32 %v79_v28, %v67_v16  ;;  %v80_v39 = vmax.f32 %v78_v33, %v66_v21  ;;  %1107 = vmatprep.subr.mxu1 %v1614_v60  ;;  %1373 = vmatprep.subr.mxu0 %v1614_v60  ;;  %v1652_v6 = vld [vmem:[#allocation3 + $0x58] sm:$0xff]  ;;  %v1656_v9 = vld [vmem:[#allocation3 + $0xd0] sm:$0xff]  ;;  %v146_v20 = vlaneseq  ;;  %2260 = vst [vmem:[#allocation19_spill] sm:$0xff] %v1703_v26  ;;  %v1716_v28 = vld [vmem:[#allocation3 + $0x20] sm:$0xff] }
  0x26   :  { %v87_v41 = vmax.f32 %v85_v37, %v72_v31  ;;  %v88_v42 = vmax.f32 %v86_v38, %v73_v32  ;;  %v95_v46 = vadd.f32 %v94_v40, %v62_v3  ;;  %v104_v50 = vadd.f32 %v103_v48, %v70_v27  ;;  %1108 = vmatpush3.msra.mxu1 %v1617_v61  ;;  %v1634_v3 = vld [vmem:[#allocation3 + $0x68] sm:$0xff]  ;;  %v1697_v22 = vld [vmem:[#allocation3 + $0x30] sm:$0xff]  ;;  %v1771_v40 = vld [vmem:[#allocation3 + $0x80] sm:$0xff] }
  0x27   :  { %v82_v43 = vmax.f32 %v80_v39, %v81_v35  ;;  %1374 = vmatpush3.msra.mxu0 %v1614_v60  ;;  %1109 = vmatprep.subr.mxu1 %v1621_v62  ;;  %2259 = vst [vmem:[#allocation18_spill] sm:$0xff] %v1697_v22  ;;  %2263 = vst [vmem:[#allocation22_spill] sm:$0xff] %v1716_v28  ;;  %v1745_v35 = vld [vmem:[#allocation3 + $0x10] sm:$0xff]  ;;  %v1762_v38 = vld [vmem:[#allocation3 + $0x8] sm:$0xff]  ;;  %v1767_v39 = vstv %s2209_s0  ;;  %s1529_s0 = smov [#allocation8]  }
  0x28   :  { %v89_v44 = vmax.f32 %v87_v41, %v74_v34  ;;  %v90_v45 = vmax.f32 %v88_v42, %v75_v36  ;;  %v96_v49 = vadd.f32 %v95_v46, %v63_v4  ;;  %v105_v52 = vadd.f32 %v104_v50, %v71_v30  ;;  %1110 = vmatpush3.msra.mxu1 %v1623_v63  ;;  %v1638_v4 = vld [vmem:[#allocation3 + $0xe0] sm:$0xff]  ;;  %v1722_v30 = vld [vmem:[#allocation3 + $0x98] sm:$0xff]  ;;  %s1076_s27 = sshll.u32 %s1529_s0, 4  ;;  %s1077_s27 = int_to_ptr.vmem [resolvable:$true] %s1076_s27 }
  0x29   :  { %83 = vmax.xlane.f32.xlu0 %v82_v43  ;;  %1375 = vmatprep.subr.mxu0 %v1621_v62  ;;  %2264 = vst [vmem:[#allocation23_spill] sm:$0xff] %v1722_v30  ;;  %2267 = vst [vmem:[#allocation26_spill] sm:$0xff] %v1745_v35  ;;  %v1781_v43 = vld [vmem:[#allocation3] sm:$0xff]  ;;  %s1496_s28 = scalar_lea.vmem %s1077_s27, 2048  ;;  %p1501_p11 = scmp.lt.s32.totalorder %s1077_s27, %s1077_s27 }
  0x2a   :  { %v91_v47 = vmax.f32 %v89_v44, %v90_v45  ;;  %v97_v51 = vadd.f32 %v96_v49, %v64_v12  ;;  %v106_v54 = vadd.f32 %v105_v52, %v72_v31  ;;  %1111 = vmatprep.subr.mxu1 %v1630_v0  ;;  %1376 = vmatpush3.msra.mxu0 %v1621_v62  ;;  %v1661_v12 = vld [vmem:[#allocation3 + $0x50] sm:$0xff]  ;;  %p1497_p10 = scmp.ne.s32.totalorder %s1077_s27, %s1496_s28  ;;  %p1502_p12 = scmp.lt.s32.totalorder %s1496_s28, %s1496_s28 }
  0x2b   :  { %1112 = vmatpush3.msra.mxu1 %v1634_v3  ;;  %1377 = vmatprep.subr.mxu0 %v1630_v0  ;;  %2269 = vst [vmem:[#allocation28_spill] sm:$0xff] %v1762_v38  ;;  %2270 = vst [vmem:[#allocation29_spill] sm:$0xff] %v1771_v40 }
  0x2c   :  { %v98_v53 = vadd.f32 %v97_v51, %v65_v13  ;;  %v107_v56 = vadd.f32 %v106_v54, %v73_v32  ;;  %1113 = vmatprep.subr.mxu1 %v1638_v4  ;;  %1378 = vmatpush3.msra.mxu0 %v1630_v0  ;;  %v1665_v13 = vld [vmem:[#allocation3 + $0xc8] sm:$0xff]  ;;  %v1733_v32 = vld [vmem:[#allocation3 + $0x90] sm:$0xff]  ;;  %2271 = vst [vmem:[#allocation30_spill] sm:$0xff] %v1781_v43  ;;  %p1503_p13 = por %p1502_p12, %p1501_p11 }
  0x2d   :  { %92 = vmax.xlane.f32.xlu0 %v91_v47  ;;  %1379 = vmatprep.subr.mxu0 %v1638_v4  ;;  %2266 = vst [vmem:[#allocation25_spill] sm:$0xff] %v1733_v32 }
  0x2e   :  { %v99_v55 = vadd.f32 %v98_v53, %v66_v21  ;;  %v108_v58 = vadd.f32 %v107_v56, %v74_v34  ;;  %1380 = vmatpush3.msra.mxu0 %v1638_v4  ;;  %v1687_v21 = vld [vmem:[#allocation3 + $0x38] sm:$0xff]  ;;  %p1504_p0 = pnand %p1503_p13, %p1497_p10 }
  0x2f   :  { %2257 = vst [vmem:[#allocation16_spill] sm:$0xff] %v1687_v21 }
  0x30   :  { %v100_v57 = vadd.f32 %v99_v55, %v67_v16  ;;  %v109_v59 = vadd.f32 %v108_v58, %v75_v36  ;;  %v1679_v16 = vld [vmem:[#allocation3 + $0x40] sm:$0xff]  ;;  %v1753_v36 = vld [vmem:[#allocation3 + $0x88] sm:$0xff] }
  0x31   :  { %2255 = vst [vmem:[#allocation14_spill] sm:$0xff] %v1679_v16  ;;  %2268 = vst [vmem:[#allocation27_spill] sm:$0xff] %v1753_v36 }
  0x42   :  { %101 = vadd.xlane.f32.xlu1 %v100_v57 }
  0x43   :  { %114 = vrot.lane.b32.xlu0 %v44_v5, %s1528_s1  ;;  %v1648_v5 = vld [vmem:[#allocation3 + $0xd8] sm:$0xff] }
  0x44   :  { %1381 = vmatprep.subr.mxu0 %v1648_v5 }
  0x45   :  { %1382 = vmatpush3.msra.mxu0 %v1648_v5 }
  0x46   :  { %110 = vadd.xlane.f32.xlu1 %v109_v59  ;;  %1383 = vmatprep.subr.mxu0 %v1656_v9 }
  0x47   :  { %144 = vrot.lane.b32.xlu0 %v59_v29, %s1528_s1  ;;  %1384 = vmatpush3.msra.mxu0 %v1656_v9  ;;  %v1718_v29 = vand.u32 127, %v146_v20 }
  0x48   :  { %1385 = vmatprep.subr.mxu0 %v1665_v13 }
  0x49   :  { %1386 = vmatpush3.msra.mxu0 %v1665_v13  ;;  %v1736_v33 = vadd.s32 640, %v1718_v29  ;;  %v1741_v34 = vadd.s32 512, %v1718_v29  ;;  %v206_v44 = vadd.s32 896, %v1718_v29  ;;  %v205_v45 = vadd.s32 768, %v1718_v29 }
  0x4a   :  { %v201_v53 = vadd.s32 256, %v1718_v29  ;;  %v202_v56 = vadd.s32 384, %v1718_v29  ;;  %vm148_vm0 = vcmp.lt.s32.totalorder %v1718_v29, 102 }
  0x4b   :  { %122 = vrot.lane.b32.xlu0 %v1559_v1, %s1528_s1  ;;  %v1644_v1 = vld [vmem:[#allocation3 + $0x60] sm:$0xff] }
  0x4c   :  { %1114 = vmatpush3.msra.mxu1 %v1644_v1 }
  0x4d   :  { %1115 = vmatprep.subr.mxu1 %v1648_v5 }
  0x4e   :  { %1116 = vmatpush3.msra.mxu1 %v1652_v6 }
  0x4f   :  { %124 = vrot.lane.b32.xlu0 %v1586_v18, %s1528_s1  ;;  %1117 = vmatprep.subr.mxu1 %v1656_v9  ;;  %v1683_v18 = vld [vmem:[#allocation3 + $0xb8] sm:$0xff] }
  0x50   :  { %1118 = vmatpush3.msra.mxu1 %v1661_v12  ;;  %2256 = vst [vmem:[#allocation15_spill] sm:$0xff] %v1683_v18 }
  0x51   :  { %1119 = vmatprep.subr.mxu1 %v1665_v13 }
  0x52   :  { %1120 = vmatpush3.msra.mxu1 %v1669_v15 }
  0x53   :  { %130 = vrot.lane.b32.xlu0 %v1568_v7, %s1528_s1  ;;  %v1673_v7 = vld [vmem:[#allocation3 + $0xc0] sm:$0xff] }
  0x54   :  { %2254 = vst [vmem:[#allocation13_spill] sm:$0xff] %v1673_v7  ;;  %1121 = vmatprep.subr.mxu1 %v1673_v7  ;;  %1387 = vmatprep.subr.mxu0 %v1673_v7 }
  0x55   :  { %1122 = vmatpush3.msra.mxu1 %v1679_v16  ;;  %1388 = vmatpush3.msra.mxu0 %v1673_v7 }
  0x56   :  { %1123 = vmatprep.subr.mxu1 %v1683_v18  ;;  %1389 = vmatprep.subr.mxu0 %v1683_v18 }
  0x57   :  { %132 = vrot.lane.b32.xlu0 %v1594_v23, %s1528_s1  ;;  %142 = vrot.lane.b32.xlu1 %v1574_v11, %s1528_s1  ;;  %v1691_v11 = vld [vmem:[#allocation3 + $0xb0] sm:$0xff]  ;;  %v195_v23 = vshrl.u32 %v146_v20, 7 }
  0x58   :  { %2258 = vst [vmem:[#allocation17_spill] sm:$0xff] %v1691_v11  ;;  %1124 = vmatpush3.msra.mxu1 %v1687_v21  ;;  %1390 = vmatpush3.msra.mxu0 %v1683_v18 }
  0x59   :  { %1125 = vmatprep.subr.mxu1 %v1691_v11  ;;  %v196_v27 = vadd.s32 8, %v195_v23  ;;  %1391 = vmatprep.subr.mxu0 %v1691_v11  ;;  %v1773_v41 = vmul.u32 1024, %v195_v23 }
  0x5a   :  { %1126 = vmatpush3.msra.mxu1 %v1697_v22  ;;  %1392 = vmatpush3.msra.mxu0 %v1691_v11 }
  0x5b   :  { %138 = vrot.lane.b32.xlu0 %v1572_v10, %s1528_s1  ;;  %116 = vrot.lane.b32.xlu1 %v1580_v14, %s1528_s1  ;;  %v1707_v10 = vld [vmem:[#allocation3 + $0x28] sm:$0xff]  ;;  %v1712_v14 = vld [vmem:[#allocation3 + $0xa0] sm:$0xff]  ;;  %v1724_v31 = vmul.u32 1024, %v196_v27  ;;  %v216_v46 = vadd.s32 %v1773_v41, %v206_v44  ;;  %v215_v47 = vadd.s32 %v1773_v41, %v205_v45  ;;  %v209_v55 = vadd.s32 %v1773_v41, %v1718_v29 }
  0x5c   :  { %2261 = vst [vmem:[#allocation20_spill] sm:$0xff] %v1707_v10  ;;  %2262 = vst [vmem:[#allocation21_spill] sm:$0xff] %v1712_v14  ;;  %1127 = vmatprep.subr.mxu1 %v1703_v26  ;;  %1393 = vmatprep.subr.mxu0 %v1703_v26  ;;  %v211_v58 = vadd.s32 %v1773_v41, %v201_v53  ;;  %v212_v23 = vadd.s32 %v1773_v41, %v202_v56 }
  0x5d   :  { %1128 = vmatpush3.msra.mxu1 %v1707_v10  ;;  %1394 = vmatpush3.msra.mxu0 %v1703_v26  ;;  %v1757_v37 = vadd.s32 %v1724_v31, %v1741_v34  ;;  %v234_v48 = vxor.u32 %v1767_v39, %v216_v46  ;;  %v1803_v49 = vadd.s32 %v1724_v31, %v206_v44 }
  0x5e   :  { %1129 = vmatprep.subr.mxu1 %v1712_v14  ;;  %1395 = vmatprep.subr.mxu0 %v1712_v14  ;;  %v1806_v50 = vadd.s32 %v1724_v31, %v205_v45  ;;  %v227_v20 = vxor.u32 %v1767_v39, %v209_v55  ;;  %v229_v46 = vxor.u32 %v1767_v39, %v211_v58 }
  0x5f   :  { %120 = vrot.lane.b32.xlu1 %v1584_v17, %s1528_s1  ;;  %v1728_v17 = vld [vmem:[#allocation3 + $0x18] sm:$0xff]  ;;  %1130 = vmatpush3.msra.mxu1 %v1716_v28  ;;  %v242_v51 = vxor.u32 %v1767_v39, %v1803_v49  ;;  %v230_v55 = vxor.u32 %v1767_v39, %v212_v23 }
  0x60   :  { %2265 = vst [vmem:[#allocation24_spill] sm:$0xff] %v1728_v17  ;;  %1131 = vmatprep.subr.mxu1 %v1722_v30  ;;  %1396 = vmatpush3.msra.mxu0 %v1712_v14  ;;  %v243_v49 = vmul.u32 2654435769, %v227_v20 }
  0x61   :  { %1132 = vmatpush3.msra.mxu1 %v1728_v17  ;;  %1397 = vmatprep.subr.mxu0 %v1722_v30 }
  0x62   :  { %1133 = vmatprep.subr.mxu1 %v1733_v32  ;;  %1398 = vmatpush3.msra.mxu0 %v1722_v30 }
  0x63   :  { %126 = vrot.lane.b32.xlu1 %v1561_v2, %s1528_s1  ;;  %v1749_v2 = vadd.s32 %v1724_v31, %v1736_v33  ;;  %1134 = vmatpush3.msra.mxu1 %v1745_v35 }
  0x64   :  { %1135 = vmatprep.subr.mxu1 %v1753_v36  ;;  %1399 = vmatprep.subr.mxu0 %v1733_v32 }
  0x65   :  { %1136 = vmatpush3.msra.mxu1 %v1762_v38  ;;  %1400 = vmatpush3.msra.mxu0 %v1733_v32 }
  0x66   :  { %1137 = vmatprep.subr.mxu1 %v1771_v40  ;;  %1401 = vmatprep.subr.mxu0 %v1753_v36 }
  0x67   :  { %128 = vrot.lane.b32.xlu1 %v1588_v19, %s1528_s1  ;;  %1138 = vmatpush3.msra.mxu1 %v1781_v43 }
  0x68   :  { %1402 = vmatpush3.msra.mxu0 %v1753_v36  ;;  %1183 = vmatprep.subr.mxu1 %v1614_v60 }
  0x69   :  { %1403 = vmatprep.subr.mxu0 %v1771_v40 }
  0x6a   :  { %1404 = vmatpush3.msra.mxu0 %v1771_v40 }
  0x6b   :  { %134 = vrot.lane.b32.xlu1 %v1570_v8, %s1528_s1  ;;  %v233_v8 = vxor.u32 %v1767_v39, %v215_v47  ;;  %1145 = vmatprep.subr.mxu0 %v1614_v60 }
  0x6f   :  { %136 = vrot.lane.b32.xlu1 %v1596_v24, %s1528_s1  ;;  %v200_v24 = vadd.s32 128, %v1718_v29 }
  0x71   :  { %v210_v57 = vadd.s32 %v1773_v41, %v200_v24  ;;  %v218_v45 = vadd.s32 %v1724_v31, %v200_v24  ;;  %v246_v24 = vmul.u32 2654435769, %v230_v55 }
  0x73   :  { %140 = vrot.lane.b32.xlu1 %v1598_v25, %s1528_s1  ;;  %v217_v25 = vadd.s32 %v1724_v31, %v1718_v29  ;;  %v228_v44 = vxor.u32 %v1767_v39, %v210_v57  ;;  %v236_v60 = vxor.u32 %v1767_v39, %v218_v45  ;;  %v259_v57 = vshra.s32 %v243_v49, 15 }
  0x74   :  { %v262_v23 = vshra.s32 %v246_v24, 15  ;;  %v220_v45 = vadd.s32 %v1724_v31, %v202_v56 }
  0x75   :  { %v235_v52 = vxor.u32 %v1767_v39, %v217_v25  ;;  %v244_v19 = vmul.u32 2654435769, %v228_v44  ;;  %v252_v38 = vmul.u32 2654435769, %v236_v60  ;;  %v275_v25 = vxor.u32 %v259_v57, %v243_v49 }
  0x76   :  { %v250_v44 = vmul.u32 2654435769, %v234_v48  ;;  %v278_v28 = vxor.u32 %v262_v23, %v246_v24  ;;  %v2274_v49 = vxor.u32 %v1767_v39, %v1757_v37  ;;  %v249_v48 = vmul.u32 2654435769, %v233_v8 }
  0x77   :  { %v251_v40 = vmul.u32 2654435769, %v235_v52  ;;  %v260_v58 = vshra.s32 %v244_v19, 15  ;;  %v268_v17 = vshra.s32 %v252_v38, 15  ;;  %v238_v24 = vxor.u32 %v1767_v39, %v220_v45 }
  0x78   :  { %v255_v57 = vmul.u32 2654435769, %v2274_v49  ;;  %v266_v37 = vshra.s32 %v250_v44, 15  ;;  %v294_v23 = vmul.u32 3266489909, %v278_v28 }
  0x79   :  { %v267_v35 = vshra.s32 %v251_v40, 15  ;;  %v276_v32 = vxor.u32 %v260_v58, %v244_v19  ;;  %v258_v58 = vmul.u32 2654435769, %v242_v51 }
  0x7a   :  { %v310_v10 = vshra.s32 %v294_v23, 13 }
  0x7b   :  { %v283_v60 = vxor.u32 %v267_v35, %v251_v40  ;;  %v292_v56 = vmul.u32 3266489909, %v276_v32  ;;  %v1863_v35 = vadd.s32 %v1773_v41, %v1741_v34  ;;  %v265_v34 = vshra.s32 %v249_v48, 15 }
  0x7d   :  { %v308_v51 = vshra.s32 %v292_v56, 13 }
  0x7f   :  { %v324_v11 = vxor.u32 %v308_v51, %v292_v56 }
  0x90   :  { %v1850_v14 = vpop.permute.xlu1 %118 }
  0xb2   :  { %v84_v54 = vpop.xlane.xlu0 %83 }
  0xb3   :  { %v1826_v27 = vmul.f32 1.9952623, %v84_v54  ;;  %v245_v54 = vmul.u32 2654435769, %v229_v46  ;;  %v2272_v46 = vxor.u32 %v1767_v39, %v1749_v2  ;;  %v1859_v2 = vadd.s32 %v1773_v41, %v1736_v33 }
  0xb4   :  { %v271_v33 = vshra.s32 %v255_v57, 15 }
  0xb5   :  { %v167_v42 = vmax.f32 %v1826_v27, 1e-30  ;;  %v261_v36 = vshra.s32 %v245_v54, 15  ;;  %v256_v52 = vmul.u32 2654435769, %v2272_v46  ;;  %v282_v46 = vxor.u32 %v266_v37, %v250_v44 }
  0xb6   :  { %v93_v59 = vpop.xlane.xlu0 %92  ;;  %vm171_vm1 = vcmp.gt.f32.partialorder %v1826_v27, 1.0  ;;  %v287_v26 = vxor.u32 %v271_v33, %v255_v57 }
  0xb7   :  { %1416 = vrsqrt.f32 %v167_v42  ;;  %v277_v30 = vxor.u32 %v261_v36, %v245_v54  ;;  %v291_v42 = vmul.u32 3266489909, %v275_v25  ;;  %v1852_v19 = vmul.f32 1.9952623, %v93_v59 }
  0xb8   :  { %v1855_v36 = vadd.s32 %v1724_v31, %v201_v53  ;;  %v284_v54 = vxor.u32 %v268_v17, %v252_v38  ;;  %v272_v59 = vshra.s32 %v256_v52, 15  ;;  %v299_v53 = vmul.u32 3266489909, %v283_v60 }
  0xb9   :  { %v293_v40 = vmul.u32 3266489909, %v277_v30  ;;  %v307_v31 = vshra.s32 %v291_v42, 13  ;;  %v168_v8 = vmax.f32 %v1852_v19, 1e-30  ;;  %v2276_v30 = vxor.u32 %v1767_v39, %v1806_v50 }
  0xba   :  { %v1831_v47 = vpop.permute.xlu0 %114  ;;  %v237_v32 = vxor.u32 %v1767_v39, %v1855_v36  ;;  %v300_v45 = vmul.u32 3266489909, %v284_v54  ;;  %v288_v49 = vxor.u32 %v272_v59, %v256_v52  ;;  %v298_v27 = vmul.u32 3266489909, %v282_v46 }
  0xbb   :  { %v257_v38 = vmul.u32 2654435769, %v2276_v30  ;;  %v309_v60 = vshra.s32 %v293_v40, 13  ;;  %v323_v36 = vxor.u32 %v307_v31, %v291_v42  ;;  %v281_v30 = vxor.u32 %v265_v34, %v249_v48 }
  0xbc   :  { %v316_v37 = vshra.s32 %v300_v45, 13  ;;  %v1883_v52 = vmul.u32 2654435769, %v238_v24  ;;  %v304_v59 = vmul.u32 3266489909, %v288_v49  ;;  %v326_v31 = vxor.u32 %v310_v10, %v294_v23 }
  0xbd   :  { %v273_v22 = vshra.s32 %v257_v38, 15  ;;  %v325_v57 = vxor.u32 %v309_v60, %v293_v40  ;;  %v303_v33 = vmul.u32 3266489909, %v287_v26  ;;  %v339_v24 = vmul.u32 2246822519, %v323_v36 }
  0xbe   :  { %v1837_v43 = vpop.permute.xlu0 %144  ;;  %v332_v51 = vxor.u32 %v316_v37, %v300_v45  ;;  %v340_v46 = vmul.u32 2246822519, %v324_v11  ;;  %v320_v40 = vshra.s32 %v304_v59, 13  ;;  %v342_v23 = vmul.u32 2246822519, %v326_v31 }
  0xbf   :  { %v341_v26 = vmul.u32 2246822519, %v325_v57  ;;  %v319_v60 = vshra.s32 %v303_v33, 13  ;;  %v270_v37 = vshra.s32 %v1883_v52, 15  ;;  %v1901_v11 = vmul.u32 2654435769, %v237_v32 }
  0xc0   :  { %v375_v31 = vcvt.s32.f32 %v339_v24  ;;  %vm172_vm2 = vcmp.gt.f32.partialorder %v1852_v19, 1.0 }
  0xc1   :  { %v1903_v18 = vcvt.s32.f32 %v341_v26 }
  0xc2   :  { %v1839_v20 = vpop.permute.xlu0 %122 }
  0xc4   :  { %v1417_v28 = vpop.eup %1416 }
  0xc5   :  { %v173_v54 = vsel %vm171_vm1, %v1417_v28, 1.0  ;;  %v297_v28 = vmul.u32 3266489909, %v281_v30  ;;  %v1907_v30 = vcvt.s32.f32 %v342_v23 }
  0xc6   :  { %v1845_v55 = vpop.permute.xlu0 %124 }
  0xc7   :  { %2273 = vst [vmem:[#allocation31_spill] sm:$0xff] %v1845_v55 }
  0xca   :  { %v1866_v25 = vpop.permute.xlu0 %130 }
  0xcb   :  { %2275 = vst [vmem:[#allocation32_spill] sm:$0xff] %v1866_v25  ;;  %v102_v17 = vpop.xlane.xlu1 %101  ;;  %v274_v25 = vshra.s32 %v258_v58, 15 }
  0xcc   :  { %v1875_v41 = vmul.f32 0.0009765625, %v102_v17  ;;  %v315_v17 = vshra.s32 %v299_v53, 13 }
  0xcd   :  { %v290_v21 = vxor.u32 %v274_v25, %v258_v58  ;;  %v314_v58 = vshra.s32 %v298_v27, 13 }
  0xce   :  { %1418 = vrsqrt.f32 %v1875_v41  ;;  %v1879_v55 = vpop.permute.xlu0 %132  ;;  %v331_v34 = vxor.u32 %v315_v17, %v299_v53  ;;  %v313_v17 = vshra.s32 %v297_v28, 13  ;;  %vm359_vm3 = vcmp.eq.f32.partialorder %v1875_v41, inf }
  0xcf   :  { %1420 = vrsqrt.f32 %v168_v8  ;;  %v111_v50 = vpop.xlane.xlu1 %110  ;;  %v1888_v8 = vmul.f32 -1.4125376, %v173_v54  ;;  %v306_v10 = vmul.u32 3266489909, %v290_v21  ;;  %v330_v36 = vxor.u32 %v314_v58, %v298_v27 }
  0xd0   :  { %v1881_v44 = vmul.f32 0.0009765625, %v111_v50  ;;  %v289_v50 = vxor.u32 %v273_v22, %v257_v38  ;;  %v347_v53 = vmul.u32 2246822519, %v331_v34  ;;  %v348_v38 = vmul.u32 2246822519, %v332_v51 }
  0xd1   :  { %v336_v21 = vxor.u32 %v320_v40, %v304_v59  ;;  %v322_v57 = vshra.s32 %v306_v10, 13  ;;  %v335_v34 = vxor.u32 %v319_v60, %v303_v33  ;;  %v329_v7 = vxor.u32 %v313_v17, %v297_v28 }
  0xd2   :  { %1422 = vrsqrt.f32 %v1881_v44  ;;  %v1886_v42 = vpop.permute.xlu0 %138  ;;  %v305_v22 = vmul.u32 3266489909, %v289_v50  ;;  %v383_v16 = vcvt.s32.f32 %v347_v53  ;;  %v384_v59 = vcvt.s32.f32 %v348_v38 }
  0xd3   :  { %v143_v48 = vpop.permute.xlu1 %142  ;;  %v346_v58 = vmul.u32 2246822519, %v330_v36  ;;  %v362_v24 = vand.u32 2147483648, %v1875_v41  ;;  %v352_v33 = vmul.u32 2246822519, %v336_v21  ;;  %vm361_vm4 = vcmp.eq.f32.partialorder %v1875_v41, 0.0 }
  0xd4   :  { %v149_v56 = vsel %vm148_vm0, %v1886_v42, %v143_v48  ;;  %v321_v45 = vshra.s32 %v305_v22, 13  ;;  %v355_v40 = vmul.f32 1.4125376, %v173_v54  ;;  %v351_v28 = vmul.u32 2246822519, %v335_v34 }
  0xd5   :  { %v1894_v25 = vmul.f32 %v1888_v8, %v149_v56  ;;  %v376_v56 = vcvt.s32.f32 %v340_v46  ;;  %v338_v46 = vxor.u32 %v322_v57, %v306_v10  ;;  %v345_v17 = vmul.u32 2246822519, %v329_v7 }
  0xd6   :  { %v337_v38 = vxor.u32 %v321_v45, %v305_v22  ;;  %v163_v10 = vsel %vm148_vm0, %v143_v48, %v1831_v47  ;;  %v382_v54 = vcvt.s32.f32 %v346_v58  ;;  %vm366_vm5 = vcmp.eq.f32.partialorder %v1881_v44, inf }
  0xd7   :  { %v117_v49 = vpop.permute.xlu1 %116  ;;  %v369_v21 = vand.u32 2147483648, %v1881_v44  ;;  %v354_v57 = vmul.u32 2246822519, %v338_v46  ;;  %vm368_vm6 = vcmp.eq.f32.partialorder %v1881_v44, 0.0 }
  0xdb   :  { %v1419_v50 = vpop.eup %1418  ;;  %v1905_v51 = vpop.permute.xlu1 %120 }
  0xdc   :  { %v1421_v27 = vpop.eup %1420  ;;  %v358_v32 = vmul.f32 %v1419_v50, %v1875_v41 }
  0xdd   :  { %v174_v60 = vsel %vm172_vm2, %v1421_v27, 1.0  ;;  %v177_v27 = vmul.f32 %v1888_v8, %v163_v10  ;;  %v387_v10 = vcvt.s32.f32 %v351_v28 }
  0xde   :  { %v360_v26 = vsel %vm359_vm3, %v1875_v41, %v358_v32  ;;  %v161_v41 = vsel %vm148_vm0, %v1831_v47, %v1850_v14  ;;  %v356_v7 = vmul.f32 1.4125376, %v174_v60  ;;  %v1931_v34 = vmul.f32 -1.4125376, %v174_v60 }
  0xdf   :  { %v1423_v23 = vpop.eup %1422  ;;  %v363_v53 = vsel %vm361_vm4, %v362_v24, %v360_v26  ;;  %v1915_v19 = vpop.permute.xlu1 %126  ;;  %v164_v47 = vsel %vm148_vm0, %v1837_v43, %v117_v49  ;;  %v162_v24 = vsel %vm148_vm0, %v117_v49, %v1905_v51  ;;  %v353_v60 = vmul.u32 2246822519, %v337_v38 }
  0xe0   :  { %v371_v36 = vmul.f32 %v363_v53, %v355_v40  ;;  %v365_v50 = vmul.f32 %v1423_v23, %v1881_v44  ;;  %v178_v40 = vmul.f32 %v1888_v8, %v161_v41  ;;  %v185_v49 = vmul.f32 %v1931_v34, %v164_v47 }
  0xe1   :  { %v159_v47 = vsel %vm148_vm0, %v1850_v14, %v1839_v20 }
  0xe2   :  { %v1927_v22 = vmul.f32 8.06549e-11, %v371_v36  ;;  %v367_v45 = vsel %vm366_vm5, %v1881_v44, %v365_v50  ;;  %v388_v50 = vcvt.s32.f32 %v352_v33 }
  0xe3   :  { %v370_v48 = vsel %vm368_vm6, %v369_v21, %v367_v45  ;;  %v1937_v32 = vpop.permute.xlu1 %128  ;;  %v186_v21 = vmul.f32 %v1931_v34, %v162_v24 }
  0xe4   :  { %v372_v58 = vmul.f32 %v370_v48, %v356_v7  ;;  %v156_v44 = vsel %vm148_vm0, %v1937_v32, %v1879_v55  ;;  %v391_v46 = vmul.f32 %v375_v31, %v1927_v22  ;;  %v392_v23 = vmul.f32 %v376_v56, %v1927_v22 }
  0xe5   :  { %v189_v26 = vmul.f32 %v1931_v34, %v156_v44  ;;  %v398_v31 = vmul.f32 %v382_v54, %v1927_v22  ;;  %v157_v56 = vsel %vm148_vm0, %v1839_v20, %v1915_v19  ;;  %v381_v54 = vcvt.s32.f32 %v345_v17 }
  0xe6   :  { %v1950_v53 = vmul.f32 8.06549e-11, %v372_v58  ;;  %v407_v36 = vadd.f32 %v391_v46, %v177_v27  ;;  %v1956_v45 = vadd.f32 %v392_v23, %v178_v40  ;;  %v390_v48 = vcvt.s32.f32 %v354_v57 }
  0xe7   :  { %v1954_v7 = vpop.permute.xlu1 %134  ;;  %v389_v27 = vcvt.s32.f32 %v353_v60  ;;  %v180_v24 = vmul.f32 %v1888_v8, %v157_v56  ;;  %v1991_v20 = vadd.f32 %v398_v31, %v1894_v25  ;;  %v397_v23 = vmul.f32 %v381_v54, %v1927_v22 }
  0xe8   :  { %v151_v33 = vsel %vm148_vm0, %v1954_v7, %v1886_v42  ;;  %1405 = vmatprep.mubr.f32.mxu0 %v407_v36  ;;  %v399_v28 = vmul.f32 %v383_v16, %v1950_v53  ;;  %v400_v38 = vmul.f32 %v384_v59, %v1950_v53  ;;  %596 = vmatprep.mubr.f32.mxu1 %v1956_v45 }
  0xe9   :  { %v183_v41 = vmul.f32 %v1888_v8, %v151_v33  ;;  %597 = vmatmul.mubr.f32.vlgmr.msra.gmra.mxu1 %v407_v36  ;;  %v393_v16 = vmul.f32 %v1903_v18, %v1927_v22  ;;  %v179_v59 = vmul.f32 %v1888_v8, %v159_v47  ;;  %v404_v57 = vmul.f32 %v388_v50, %v1950_v53 }
  0xea   :  { %v415_v58 = vadd.f32 %v399_v28, %v185_v49  ;;  %v1975_v42 = vadd.f32 %v400_v38, %v186_v21  ;;  %1184 = vmatpush3.msra.mxu1 %v1617_v61  ;;  %v403_v44 = vmul.f32 %v387_v10, %v1950_v53  ;;  %v394_v18 = vmul.f32 %v1907_v30, %v1927_v22 }
  0xeb   :  { %v137_v17 = vpop.permute.xlu1 %136  ;;  %1185 = vmatprep.subr.mxu1 %v1621_v62  ;;  %v406_v30 = vmul.f32 %v390_v48, %v1950_v53  ;;  %v405_v25 = vmul.f32 %v389_v27, %v1950_v53  ;;  %v269_v36 = vshra.s32 %v1901_v11, 15  ;;  %v2012_v10 = vadd.f32 %v397_v23, %v183_v41 }
  0xec   :  { %v154_v14 = vsel %vm148_vm0, %v1879_v55, %v137_v17  ;;  %1406 = vmatmul.mubr.f32.vlgmr.msra.gmra.mxu0 %v415_v58  ;;  %1186 = vmatpush3.msra.mxu1 %v1623_v63  ;;  %v1996_v40 = vadd.f32 %v403_v44, %v189_v26  ;;  %v2001_v55 = vadd.f32 %v393_v16, %v179_v59  ;;  %v2280_v16 = vld [vmem:[#allocation14_spill] sm:$0xff]  ;;  %v2282_v44 = vld [vmem:[#allocation16_spill] sm:$0xff] }
  0xed   :  { %v190_v46 = vmul.f32 %v1931_v34, %v154_v14  ;;  %601 = vmatprep.mubr.f32.mxu1 %v1975_v42  ;;  %1146 = vmatpush3.msra.mxu0 %v1617_v61  ;;  %v286_v26 = vxor.u32 %v270_v37, %v1883_v52  ;;  %v2016_v49 = vadd.f32 %v394_v18, %v180_v24  ;;  %v2283_v18 = vld [vmem:[#allocation17_spill] sm:$0xff] }
  0xee   :  { %1187 = vmatprep.subr.mxu1 %v1630_v0  ;;  %602 = vmatmul.mubr.f32.gmra.mxu1 %v415_v58  ;;  %v2277_v52 = vxor.u32 %v1767_v39, %v1859_v2  ;;  %v2278_v28 = vxor.u32 %v1767_v39, %v1863_v35  ;;  %v285_v2 = vxor.u32 %v269_v36, %v1901_v11  ;;  %v2279_v58 = vld [vmem:[#allocation13_spill] sm:$0xff] }
  0xef   :  { %1147 = vmatprep.subr.mxu0 %v1621_v62  ;;  %v141_v60 = vpop.permute.xlu1 %140  ;;  %v2010_v50 = vadd.f32 %v404_v57, %v190_v46  ;;  %673 = vmatprep.mubr.f32.mxu0 %v2001_v55  ;;  %v2284_v46 = vld [vmem:[#allocation18_spill] sm:$0xff] }
  0xf0   :  { %1188 = vmatpush3.msra.mxu1 %v1634_v3  ;;  %v150_v21 = vsel %vm148_vm0, %v141_v60, %v1837_v43  ;;  %v152_v31 = vsel %vm148_vm0, %v137_v17, %v141_v60  ;;  %v248_v37 = vmul.u32 2654435769, %v2277_v52  ;;  %1148 = vmatpush3.msra.mxu0 %v1623_v63  ;;  %v247_v38 = vmul.u32 2654435769, %v2278_v28  ;;  %v2281_v17 = vld [vmem:[#allocation15_spill] sm:$0xff]  ;;  %v2290_v28 = vld [vmem:[#allocation24_spill] sm:$0xff] }
  0xf1   :  { %1189 = vmatprep.subr.mxu1 %v1638_v4  ;;  %v191_v56 = vmul.f32 %v1931_v34, %v152_v31  ;;  %v192_v33 = vmul.f32 %v1931_v34, %v150_v21  ;;  %750 = vmatprep.mubr.f32.mxu1 %v2016_v49  ;;  %v302_v43 = vmul.u32 3266489909, %v286_v26  ;;  %v301_v48 = vmul.u32 3266489909, %v285_v2  ;;  %v2286_v26 = vld [vmem:[#allocation20_spill] sm:$0xff]  ;;  %v2287_v21 = vld [vmem:[#allocation21_spill] sm:$0xff] }
  0xf2   :  { %1149 = vmatprep.subr.mxu0 %v1630_v0  ;;  %1190 = vmatpush3.msra.mxu1 %v1644_v1  ;;  %v264_v39 = vshra.s32 %v248_v37, 15  ;;  %v263_v35 = vshra.s32 %v247_v38, 15  ;;  %v2288_v31 = vld [vmem:[#allocation22_spill] sm:$0xff] }
  0xf3   :  { %1150 = vmatpush3.msra.mxu0 %v1634_v3  ;;  %v2038_v41 = vadd.f32 %v406_v30, %v192_v33  ;;  %v2040_v54 = vadd.f32 %v405_v25, %v191_v56  ;;  %1191 = vmatprep.subr.mxu1 %v1648_v5  ;;  %v318_v11 = vshra.s32 %v302_v43, 13  ;;  %v317_v24 = vshra.s32 %v301_v48, 13  ;;  %v2285_v25 = vld [vmem:[#allocation19_spill] sm:$0xff] }
  0xf4   :  { %1151 = vmatprep.subr.mxu0 %v1638_v4  ;;  %1192 = vmatpush3.msra.mxu1 %v1652_v6  ;;  %v280_v27 = vxor.u32 %v264_v39, %v248_v37  ;;  %v279_v47 = vxor.u32 %v263_v35, %v247_v38  ;;  %v2289_v56 = vld [vmem:[#allocation23_spill] sm:$0xff]  ;;  %v2292_v39 = vld [vmem:[#allocation25_spill] sm:$0xff]  ;;  %v2293_v35 = vld [vmem:[#allocation26_spill] sm:$0xff] }
  0xf5   :  { %1152 = vmatpush3.msra.mxu0 %v1644_v1  ;;  %1193 = vmatprep.subr.mxu1 %v1656_v9  ;;  %v334_v59 = vxor.u32 %v318_v11, %v302_v43  ;;  %v333_v30 = vxor.u32 %v317_v24, %v301_v48  ;;  %v2291_v43 = vld [vmem:[#allocation31_spill] sm:$0xff]  ;;  %v2295_v24 = vld [vmem:[#allocation28_spill] sm:$0xff] }
  0xf6   :  { %1153 = vmatprep.subr.mxu0 %v1648_v5  ;;  %1194 = vmatpush3.msra.mxu1 %v1661_v12  ;;  %v296_v57 = vmul.u32 3266489909, %v280_v27  ;;  %v295_v14 = vmul.u32 3266489909, %v279_v47  ;;  %v158_v2 = vsel %vm148_vm0, %v2291_v43, %v1937_v32  ;;  %v2294_v27 = vld [vmem:[#allocation27_spill] sm:$0xff] }
  0xf7   :  { %1154 = vmatpush3.msra.mxu0 %v1652_v6  ;;  %1195 = vmatprep.subr.mxu1 %v1665_v13  ;;  %v350_v23 = vmul.u32 2246822519, %v334_v59  ;;  %v349_v37 = vmul.u32 2246822519, %v333_v30  ;;  %v188_v59 = vmul.f32 %v1931_v34, %v158_v2 }
  0xf8   :  { %1155 = vmatprep.subr.mxu0 %v1656_v9  ;;  %1196 = vmatpush3.msra.mxu1 %v1669_v15  ;;  %v312_v60 = vshra.s32 %v296_v57, 13  ;;  %v311_v36 = vshra.s32 %v295_v14, 13 }
  0xf9   :  { %1156 = vmatpush3.msra.mxu0 %v1661_v12  ;;  %1197 = vmatprep.subr.mxu1 %v2279_v58  ;;  %v386_v52 = vcvt.s32.f32 %v350_v23  ;;  %v385_v48 = vcvt.s32.f32 %v349_v37  ;;  %v2297_v23 = vld [vmem:[#allocation32_spill] sm:$0xff] }
  0xfa   :  { %1157 = vmatprep.subr.mxu0 %v1665_v13  ;;  %1198 = vmatpush3.msra.mxu1 %v2280_v16  ;;  %v328_v33 = vxor.u32 %v312_v60, %v296_v57  ;;  %v327_v38 = vxor.u32 %v311_v36, %v295_v14  ;;  %v160_v57 = vsel %vm148_vm0, %v1905_v51, %v2291_v43  ;;  %v2296_v14 = vld [vmem:[#allocation29_spill] sm:$0xff]  ;;  %v2298_v60 = vld [vmem:[#allocation30_spill] sm:$0xff]  ;;  %v2299_v51 = vld [vmem:[#allocation12_spill] sm:$0xff] }
  0xfb   :  { %1158 = vmatpush3.msra.mxu0 %v1669_v15  ;;  %1199 = vmatprep.subr.mxu1 %v2281_v17  ;;  %v402_v11 = vmul.f32 %v386_v52, %v1950_v53  ;;  %v153_v30 = vsel %vm148_vm0, %v2297_v23, %v1954_v7  ;;  %v401_v52 = vmul.f32 %v385_v48, %v1950_v53 }
  0xfc   :  { %1159 = vmatprep.subr.mxu0 %v2279_v58  ;;  %1200 = vmatpush3.msra.mxu1 %v2282_v44  ;;  %v344_v47 = vmul.u32 2246822519, %v328_v33  ;;  %v343_v32 = vmul.u32 2246822519, %v327_v38  ;;  %v187_v33 = vmul.f32 %v1931_v34, %v160_v57  ;;  %v182_v38 = vmul.f32 %v1888_v8, %v153_v30 }
  0xfd   :  { %1160 = vmatpush3.msra.mxu0 %v2280_v16  ;;  %1201 = vmatprep.subr.mxu1 %v2283_v18  ;;  %v2104_v36 = vadd.f32 %v402_v11, %v188_v59  ;;  %v155_v34 = vsel %vm148_vm0, %v1915_v19, %v2297_v23  ;;  %v1438_v19 = vld [vmem:[#allocation3 + $0xc0] sm:$0xff] }
  0xfe   :  { %1161 = vmatprep.subr.mxu0 %v2281_v17  ;;  %1202 = vmatpush3.msra.mxu1 %v2284_v46  ;;  %v380_v37 = vcvt.s32.f32 %v344_v47  ;;  %v379_v7 = vcvt.s32.f32 %v343_v32  ;;  %v417_v53 = vadd.f32 %v401_v52, %v187_v33  ;;  %v181_v2 = vmul.f32 %v1888_v8, %v155_v34  ;;  %v1437_v8 = vld [vmem:[#allocation3 + $0x48] sm:$0xff] }
  0xff   :  { %1162 = vmatpush3.msra.mxu0 %v2282_v44  ;;  %1203 = vmatprep.subr.mxu1 %v2285_v25 }
 0x100   :  { %1163 = vmatprep.subr.mxu0 %v2283_v18  ;;  %1204 = vmatpush3.msra.mxu1 %v2286_v26  ;;  %v395_v43 = vmul.f32 %v379_v7, %v1927_v22 }
 0x101   :  { %1164 = vmatpush3.msra.mxu0 %v2284_v46  ;;  %1205 = vmatprep.subr.mxu1 %v2287_v21 }
 0x102   :  { %1165 = vmatprep.subr.mxu0 %v2285_v25  ;;  %1206 = vmatpush3.msra.mxu1 %v2288_v31  ;;  %v411_v29 = vadd.f32 %v395_v43, %v181_v2 }
 0x103   :  { %1166 = vmatpush3.msra.mxu0 %v2286_v26  ;;  %1207 = vmatprep.subr.mxu1 %v2289_v56 }
 0x104   :  { %1167 = vmatprep.subr.mxu0 %v2287_v21  ;;  %1208 = vmatpush3.msra.mxu1 %v2290_v28 }
 0x105   :  { %1168 = vmatpush3.msra.mxu0 %v2288_v31  ;;  %1209 = vmatprep.subr.mxu1 %v2292_v39 }
 0x106   :  { %1169 = vmatprep.subr.mxu0 %v2289_v56  ;;  %1210 = vmatpush3.msra.mxu1 %v2293_v35 }
 0x107   :  { %1170 = vmatpush3.msra.mxu0 %v2290_v28  ;;  %1211 = vmatprep.subr.mxu1 %v2294_v27 }
 0x108   :  { %1171 = vmatprep.subr.mxu0 %v2292_v39  ;;  %1212 = vmatpush3.msra.mxu1 %v2295_v24 }
 0x109   :  { %1172 = vmatpush3.msra.mxu0 %v2293_v35  ;;  %1213 = vmatprep.subr.mxu1 %v2296_v14 }
 0x10a   :  { %1173 = vmatprep.subr.mxu0 %v2294_v27  ;;  %1214 = vmatpush3.msra.mxu1 %v2298_v60 }
 0x10b   :  { %1174 = vmatpush3.msra.mxu0 %v2295_v24  ;;  %751 = vmatmul.mubr.f32.vlgmr.msra.gmra.mxu1 %v2001_v55  ;;  %v396_v55 = vmul.f32 %v380_v37, %v1927_v22  ;;  %v1439_v22 = vld [vmem:[#allocation3 + $0x40] sm:$0xff] }
 0x10c   :  { %1259 = vmatprep.subr.mxu1 %v2299_v51  ;;  %1175 = vmatprep.subr.mxu0 %v2296_v14 }
 0x10d   :  { %755 = vmatprep.mubr.f32.mxu1 %v2104_v36  ;;  %1260 = vmatpush3.msra.mxu1 %v1617_v61 }
 0x10e   :  { %1176 = vmatpush3.msra.mxu0 %v2298_v60  ;;  %1261 = vmatprep.subr.mxu1 %v1621_v62 }
 0x10f   :  { %674 = vmatmul.mubr.f32.vlgmr.msra.gmra.mxu0 %v1956_v45  ;;  %1221 = vmatprep.subr.mxu0 %v2299_v51  ;;  %v2127_v45 = vadd.f32 %v396_v55, %v182_v38 }
 0x110   :  { %1262 = vmatpush3.msra.mxu1 %v1623_v63  ;;  %678 = vmatprep.mubr.f32.mxu0 %v417_v53 }
 0x111   :  { %756 = vmatmul.mubr.f32.gmra.mxu1 %v417_v53  ;;  %1222 = vmatpush3.msra.mxu0 %v1617_v61  ;;  %v1424_v61 = vld [vmem:[#allocation3 + $0xf8] sm:$0xff] }
 0x112   :  { %1263 = vmatprep.subr.mxu1 %v1630_v0  ;;  %1223 = vmatprep.subr.mxu0 %v1621_v62  ;;  %v1425_v62 = vld [vmem:[#allocation3 + $0x78] sm:$0xff] }
 0x113   :  { %1264 = vmatpush3.msra.mxu1 %v1634_v3  ;;  %904 = vmatprep.mubr.f32.mxu1 %v2127_v45 }
 0x114   :  { %1224 = vmatpush3.msra.mxu0 %v1623_v63  ;;  %1265 = vmatprep.subr.mxu1 %v1638_v4  ;;  %v1426_v63 = vld [vmem:[#allocation3 + $0xf0] sm:$0xff] }
 0x115   :  { %679 = vmatmul.mubr.f32.gmra.mxu0 %v1975_v42  ;;  %1225 = vmatprep.subr.mxu0 %v1630_v0  ;;  %v1427_v0 = vld [vmem:[#allocation3 + $0x70] sm:$0xff]  ;;  %v1440_v42 = vld [vmem:[#allocation3 + $0xb8] sm:$0xff] }
 0x116   :  { %1266 = vmatpush3.msra.mxu1 %v1644_v1  ;;  %1226 = vmatpush3.msra.mxu0 %v1634_v3  ;;  %v1428_v3 = vld [vmem:[#allocation3 + $0xe8] sm:$0xff] }
 0x117   :  { %827 = vmatprep.mubr.f32.mxu0 %v411_v29  ;;  %1267 = vmatprep.subr.mxu1 %v1648_v5 }
 0x118   :  { %1227 = vmatprep.subr.mxu0 %v1638_v4  ;;  %1268 = vmatpush3.msra.mxu1 %v1652_v6  ;;  %v1429_v4 = vld [vmem:[#allocation3 + $0x68] sm:$0xff] }
 0x119   :  { %1228 = vmatpush3.msra.mxu0 %v1644_v1  ;;  %1269 = vmatprep.subr.mxu1 %v1656_v9  ;;  %v1430_v1 = vld [vmem:[#allocation3 + $0xe0] sm:$0xff] }
 0x11a   :  { %1229 = vmatprep.subr.mxu0 %v1648_v5  ;;  %1270 = vmatpush3.msra.mxu1 %v1661_v12  ;;  %v1431_v5 = vld [vmem:[#allocation3 + $0x60] sm:$0xff] }
 0x11b   :  { %1230 = vmatpush3.msra.mxu0 %v1652_v6  ;;  %1271 = vmatprep.subr.mxu1 %v1665_v13  ;;  %v1432_v6 = vld [vmem:[#allocation3 + $0xd8] sm:$0xff] }
 0x11c   :  { %1231 = vmatprep.subr.mxu0 %v1656_v9  ;;  %1272 = vmatpush3.msra.mxu1 %v1669_v15  ;;  %v1433_v9 = vld [vmem:[#allocation3 + $0x58] sm:$0xff] }
 0x11d   :  { %1232 = vmatpush3.msra.mxu0 %v1661_v12  ;;  %1273 = vmatprep.subr.mxu1 %v2279_v58  ;;  %v1434_v12 = vld [vmem:[#allocation3 + $0xd0] sm:$0xff] }
 0x11e   :  { %1233 = vmatprep.subr.mxu0 %v1665_v13  ;;  %1274 = vmatpush3.msra.mxu1 %v2280_v16  ;;  %v1435_v13 = vld [vmem:[#allocation3 + $0x50] sm:$0xff] }
 0x11f   :  { %1234 = vmatpush3.msra.mxu0 %v1669_v15  ;;  %1275 = vmatprep.subr.mxu1 %v2281_v17  ;;  %v1436_v15 = vld [vmem:[#allocation3 + $0xc8] sm:$0xff] }
 0x120   :  { %1235 = vmatprep.subr.mxu0 %v2279_v58  ;;  %1276 = vmatpush3.msra.mxu1 %v2282_v44  ;;  %v1444_v58 = vld [vmem:[#allocation3 + $0xa8] sm:$0xff] }
 0x121   :  { %1236 = vmatpush3.msra.mxu0 %v2280_v16  ;;  %1277 = vmatprep.subr.mxu1 %v2283_v18  ;;  %v1445_v16 = vld [vmem:[#allocation3 + $0x28] sm:$0xff] }
 0x122   :  { %1237 = vmatprep.subr.mxu0 %v2281_v17  ;;  %1278 = vmatpush3.msra.mxu1 %v2284_v46  ;;  %v1446_v17 = vld [vmem:[#allocation3 + $0xa0] sm:$0xff] }
 0x123   :  { %1238 = vmatpush3.msra.mxu0 %v2282_v44  ;;  %1279 = vmatprep.subr.mxu1 %v2285_v25  ;;  %v1447_v44 = vld [vmem:[#allocation3 + $0x20] sm:$0xff] }
 0x124   :  { %1239 = vmatprep.subr.mxu0 %v2283_v18  ;;  %1280 = vmatpush3.msra.mxu1 %v2286_v26  ;;  %v1448_v18 = vld [vmem:[#allocation3 + $0x98] sm:$0xff] }
 0x125   :  { %1240 = vmatpush3.msra.mxu0 %v2284_v46  ;;  %1281 = vmatprep.subr.mxu1 %v2287_v21  ;;  %v1449_v46 = vld [vmem:[#allocation3 + $0x18] sm:$0xff] }
 0x126   :  { %1241 = vmatprep.subr.mxu0 %v2285_v25  ;;  %1282 = vmatpush3.msra.mxu1 %v2288_v31  ;;  %v1450_v25 = vld [vmem:[#allocation3 + $0x90] sm:$0xff] }
 0x127   :  { %1242 = vmatpush3.msra.mxu0 %v2286_v26  ;;  %1283 = vmatprep.subr.mxu1 %v2289_v56  ;;  %v1451_v26 = vld [vmem:[#allocation3 + $0x10] sm:$0xff] }
 0x128   :  { %1243 = vmatprep.subr.mxu0 %v2287_v21  ;;  %1284 = vmatpush3.msra.mxu1 %v2290_v28  ;;  %v1452_v21 = vld [vmem:[#allocation3 + $0x88] sm:$0xff] }
 0x129   :  { %1244 = vmatpush3.msra.mxu0 %v2288_v31  ;;  %1285 = vmatprep.subr.mxu1 %v2292_v39  ;;  %v1453_v31 = vld [vmem:[#allocation3 + $0x8] sm:$0xff] }
 0x12a   :  { %1245 = vmatprep.subr.mxu0 %v2289_v56  ;;  %1286 = vmatpush3.msra.mxu1 %v2293_v35  ;;  %v1454_v56 = vld [vmem:[#allocation3 + $0x80] sm:$0xff] }
 0x12b   :  { %1246 = vmatpush3.msra.mxu0 %v2290_v28  ;;  %1287 = vmatprep.subr.mxu1 %v2294_v27  ;;  %v1455_v28 = vld [vmem:[#allocation3] sm:$0xff] }
 0x12c   :  { %1247 = vmatprep.subr.mxu0 %v2292_v39  ;;  %1288 = vmatpush3.msra.mxu1 %v2295_v24 }
 0x12d   :  { %1248 = vmatpush3.msra.mxu0 %v2293_v35  ;;  %1289 = vmatprep.subr.mxu1 %v2296_v14 }
 0x12e   :  { %1249 = vmatprep.subr.mxu0 %v2294_v27  ;;  %1290 = vmatpush3.msra.mxu1 %v2298_v60 }
 0x12f   :  { %1250 = vmatpush3.msra.mxu0 %v2295_v24  ;;  %905 = vmatmul.mubr.f32.vlgmr.msra.gmra.mxu1 %v411_v29 }
 0x130   :  { %1335 = vmatprep.subr.mxu1 %v1424_v61  ;;  %1251 = vmatprep.subr.mxu0 %v2296_v14 }
 0x131   :  { %909 = vmatprep.mubr.f32.mxu1 %v2010_v50  ;;  %1336 = vmatpush3.msra.mxu1 %v1425_v62 }
 0x132   :  { %1252 = vmatpush3.msra.mxu0 %v2298_v60  ;;  %1337 = vmatprep.subr.mxu1 %v1426_v63 }
 0x133   :  { %828 = vmatmul.mubr.f32.vlgmr.msra.gmra.mxu0 %v2016_v49  ;;  %1297 = vmatprep.subr.mxu0 %v1424_v61  ;;  %v1443_v49 = vld [vmem:[#allocation3 + $0x30] sm:$0xff] }
 0x134   :  { %1338 = vmatpush3.msra.mxu1 %v1427_v0  ;;  %832 = vmatprep.mubr.f32.mxu0 %v1996_v40 }
 0x135   :  { %910 = vmatmul.mubr.f32.gmra.mxu1 %v1996_v40  ;;  %1298 = vmatpush3.msra.mxu0 %v1425_v62  ;;  %v1442_v40 = vld [vmem:[#allocation3 + $0xb0] sm:$0xff] }
 0x136   :  { %1339 = vmatprep.subr.mxu1 %v1428_v3  ;;  %1299 = vmatprep.subr.mxu0 %v1426_v63 }
 0x137   :  { %1340 = vmatpush3.msra.mxu1 %v1429_v4  ;;  %1058 = vmatprep.mubr.f32.mxu1 %v1991_v20  ;;  %v1441_v20 = vld [vmem:[#allocation3 + $0x38] sm:$0xff] }
 0x138   :  { %1300 = vmatpush3.msra.mxu0 %v1427_v0  ;;  %1341 = vmatprep.subr.mxu1 %v1430_v1 }
 0x139   :  { %833 = vmatmul.mubr.f32.gmra.mxu0 %v2104_v36  ;;  %1301 = vmatprep.subr.mxu0 %v1428_v3 }
 0x13a   :  { %1342 = vmatpush3.msra.mxu1 %v1431_v5  ;;  %1302 = vmatpush3.msra.mxu0 %v1429_v4 }
 0x13b   :  { %981 = vmatprep.mubr.f32.mxu0 %v2012_v10  ;;  %1343 = vmatprep.subr.mxu1 %v1432_v6 }
 0x13c   :  { %1303 = vmatprep.subr.mxu0 %v1430_v1  ;;  %1344 = vmatpush3.msra.mxu1 %v1433_v9 }
 0x13d   :  { %1304 = vmatpush3.msra.mxu0 %v1431_v5  ;;  %1345 = vmatprep.subr.mxu1 %v1434_v12 }
 0x13e   :  { %1305 = vmatprep.subr.mxu0 %v1432_v6  ;;  %1346 = vmatpush3.msra.mxu1 %v1435_v13 }
 0x13f   :  { %1306 = vmatpush3.msra.mxu0 %v1433_v9  ;;  %1347 = vmatprep.subr.mxu1 %v1436_v15 }
 0x140   :  { %1307 = vmatprep.subr.mxu0 %v1434_v12  ;;  %1348 = vmatpush3.msra.mxu1 %v1437_v8 }
 0x141   :  { %1308 = vmatpush3.msra.mxu0 %v1435_v13  ;;  %1349 = vmatprep.subr.mxu1 %v1438_v19 }
 0x142   :  { %1309 = vmatprep.subr.mxu0 %v1436_v15  ;;  %1350 = vmatpush3.msra.mxu1 %v1439_v22 }
 0x143   :  { %1310 = vmatpush3.msra.mxu0 %v1437_v8  ;;  %1351 = vmatprep.subr.mxu1 %v1440_v42 }
 0x144   :  { %1311 = vmatprep.subr.mxu0 %v1438_v19  ;;  %1352 = vmatpush3.msra.mxu1 %v1441_v20 }
 0x145   :  { %1312 = vmatpush3.msra.mxu0 %v1439_v22  ;;  %1353 = vmatprep.subr.mxu1 %v1442_v40 }
 0x146   :  { %1313 = vmatprep.subr.mxu0 %v1440_v42  ;;  %1354 = vmatpush3.msra.mxu1 %v1443_v49 }
 0x147   :  { %1314 = vmatpush3.msra.mxu0 %v1441_v20  ;;  %1355 = vmatprep.subr.mxu1 %v1444_v58 }
 0x148   :  { %1315 = vmatprep.subr.mxu0 %v1442_v40  ;;  %1356 = vmatpush3.msra.mxu1 %v1445_v16 }
 0x149   :  { %1316 = vmatpush3.msra.mxu0 %v1443_v49  ;;  %1357 = vmatprep.subr.mxu1 %v1446_v17 }
 0x14a   :  { %1317 = vmatprep.subr.mxu0 %v1444_v58  ;;  %1358 = vmatpush3.msra.mxu1 %v1447_v44 }
 0x14b   :  { %1318 = vmatpush3.msra.mxu0 %v1445_v16  ;;  %1359 = vmatprep.subr.mxu1 %v1448_v18 }
 0x14c   :  { %1319 = vmatprep.subr.mxu0 %v1446_v17  ;;  %1360 = vmatpush3.msra.mxu1 %v1449_v46 }
 0x14d   :  { %1320 = vmatpush3.msra.mxu0 %v1447_v44  ;;  %1361 = vmatprep.subr.mxu1 %v1450_v25 }
 0x14e   :  { %1321 = vmatprep.subr.mxu0 %v1448_v18  ;;  %1362 = vmatpush3.msra.mxu1 %v1451_v26 }
 0x14f   :  { %1322 = vmatpush3.msra.mxu0 %v1449_v46  ;;  %1363 = vmatprep.subr.mxu1 %v1452_v21 }
 0x150   :  { %1323 = vmatprep.subr.mxu0 %v1450_v25  ;;  %1364 = vmatpush3.msra.mxu1 %v1453_v31 }
 0x151   :  { %1324 = vmatpush3.msra.mxu0 %v1451_v26  ;;  %1365 = vmatprep.subr.mxu1 %v1454_v56 }
 0x152   :  { %1325 = vmatprep.subr.mxu0 %v1452_v21  ;;  %1366 = vmatpush3.msra.mxu1 %v2298_v60 }
 0x153   :  { %1326 = vmatpush3.msra.mxu0 %v1453_v31  ;;  %1059 = vmatmul.mubr.f32.vlgmr.msra.gmra.mxu1 %v2012_v10 }
 0x154   :  { %1327 = vmatprep.subr.mxu0 %v1454_v56  ;;  %1063 = vmatprep.mubr.f32.mxu1 %v2038_v41 }
 0x155   :  { %1328 = vmatpush3.msra.mxu0 %v1455_v28 }
 0x156   :  { %982 = vmatmul.mubr.f32.vlgmr.msra.gmra.mxu0 %v2127_v45 }
 0x157   :  { %986 = vmatprep.mubr.f32.mxu0 %v2040_v54  ;;  %1064 = vmatmul.mubr.f32.gmra.mxu1 %v2040_v54 }
 0x15a   :  { %987 = vmatmul.mubr.f32.gmra.mxu0 %v2010_v50 }
 0x1a9   :  { %v1139_v39 = vpop.f32.mrf.mxu1 }
 0x1ab   :  { %v1140_v35 = vpop.f32.mrf.mxu1 }
 0x1ac   :  { %v1407_v11 = vpop.f32.mrf.mxu0  ;;  %v1141_v48 = vadd.f32 %v1140_v35, %v1139_v39 }
 0x1ad   :  { %531 = vst [vmem:[#allocation8 + $0x40] sm:$0xff] %v1407_v11 }
 0x1ae   :  { %v521_v27 = vpop.f32.mrf.mxu0  ;;  %607 = vst [vmem:[#allocation8 + $0x8] sm:$0xff] %v1141_v48  ;;  %v1142_v10 = vpop.f32.mrf.mxu1 }
 0x1af   :  { %530 = vst [vmem:[#allocation8] sm:$0xff] %v521_v27 }
 0x1b0   :  { %v1143_v41 = vpop.f32.mrf.mxu1 }
 0x1b1   :  { %v1144_v47 = vadd.f32 %v1143_v41, %v1142_v10 }
 0x1b3   :  { %608 = vst [vmem:[#allocation8 + $0x48] sm:$0xff] %v1144_v47 }
 0x1cb   :  { %v1215_v59 = vpop.f32.mrf.mxu1 }
 0x1cd   :  { %v1216_v24 = vpop.f32.mrf.mxu1 }
 0x1ce   :  { %v1217_v32 = vadd.f32 %v1216_v24, %v1215_v59 }
 0x1cf   :  { %v1177_v57 = vpop.f32.mrf.mxu0 }
 0x1d0   :  { %761 = vst [vmem:[#allocation8 + $0x18] sm:$0xff] %v1217_v32 }
 0x1d1   :  { %v1218_v54 = vpop.f32.mrf.mxu1  ;;  %v1178_v14 = vpop.f32.mrf.mxu0 }
 0x1d2   :  { %v1179_v50 = vadd.f32 %v1178_v14, %v1177_v57 }
 0x1d3   :  { %v1219_v23 = vpop.f32.mrf.mxu1 }
 0x1d4   :  { %684 = vst [vmem:[#allocation8 + $0x10] sm:$0xff] %v1179_v50  ;;  %v1220_v30 = vadd.f32 %v1219_v23, %v1218_v54 }
 0x1d5   :  { %v1180_v60 = vpop.f32.mrf.mxu0 }
 0x1d6   :  { %762 = vst [vmem:[#allocation8 + $0x58] sm:$0xff] %v1220_v30 }
 0x1d7   :  { %v1181_v36 = vpop.f32.mrf.mxu0 }
 0x1d8   :  { %v1182_v52 = vadd.f32 %v1181_v36, %v1180_v60 }
 0x1da   :  { %685 = vst [vmem:[#allocation8 + $0x50] sm:$0xff] %v1182_v52 }
 0x1ef   :  { %v1291_v51 = vpop.f32.mrf.mxu1 }
 0x1f1   :  { %v1292_v37 = vpop.f32.mrf.mxu1 }
 0x1f2   :  { %v1293_v33 = vadd.f32 %v1292_v37, %v1291_v51 }
 0x1f3   :  { %v1253_v7 = vpop.f32.mrf.mxu0 }
 0x1f4   :  { %915 = vst [vmem:[#allocation8 + $0x28] sm:$0xff] %v1293_v33 }
 0x1f5   :  { %v1294_v38 = vpop.f32.mrf.mxu1  ;;  %v1254_v53 = vpop.f32.mrf.mxu0 }
 0x1f6   :  { %v1255_v34 = vadd.f32 %v1254_v53, %v1253_v7 }
 0x1f7   :  { %v1295_v55 = vpop.f32.mrf.mxu1 }
 0x1f8   :  { %838 = vst [vmem:[#allocation8 + $0x20] sm:$0xff] %v1255_v34  ;;  %v1296_v43 = vadd.f32 %v1295_v55, %v1294_v38 }
 0x1f9   :  { %v1256_v45 = vpop.f32.mrf.mxu0 }
 0x1fa   :  { %916 = vst [vmem:[#allocation8 + $0x68] sm:$0xff] %v1296_v43 }
 0x1fb   :  { %v1257_v2 = vpop.f32.mrf.mxu0 }
 0x1fc   :  { %v1258_v29 = vadd.f32 %v1257_v2, %v1256_v45 }
 0x1fe   :  { %839 = vst [vmem:[#allocation8 + $0x60] sm:$0xff] %v1258_v29 }
 0x213   :  { %v1367_v61 = vpop.f32.mrf.mxu1 }
 0x215   :  { %v1368_v62 = vpop.f32.mrf.mxu1 }
 0x216   :  { %v1329_v63 = vpop.f32.mrf.mxu0  ;;  %v1369_v0 = vadd.f32 %v1368_v62, %v1367_v61 }
 0x217   :  { %v1370_v3 = vpop.f32.mrf.mxu1 }
 0x218   :  { %v1330_v4 = vpop.f32.mrf.mxu0  ;;  %1069 = vst [vmem:[#allocation8 + $0x38] sm:$0xff] %v1369_v0 }
 0x219   :  { %v1331_v1 = vadd.f32 %v1330_v4, %v1329_v63  ;;  %v1371_v5 = vpop.f32.mrf.mxu1 }
 0x21a   :  { %v1332_v6 = vpop.f32.mrf.mxu0  ;;  %v1372_v9 = vadd.f32 %v1371_v5, %v1370_v3 }
 0x21b   :  { %992 = vst [vmem:[#allocation8 + $0x30] sm:$0xff] %v1331_v1 }
 0x21c   :  { %v1333_v12 = vpop.f32.mrf.mxu0  ;;  %1070 = vst [vmem:[#allocation8 + $0x78] sm:$0xff] %v1372_v9 }
 0x21d   :  { %v1334_v13 = vadd.f32 %v1333_v12, %v1332_v6 }
 0x21f   :  { %993 = vst [vmem:[#allocation8 + $0x70] sm:$0xff] %v1334_v13 }
 0x220   :  { %1507 = shalt.err (!%p1504_p0)
}
 0x221   :  { %1082 = dma.vmem_to_hbm [thread:$0]  %s1077_s27, 2048, %s2212_s3, [#allocation5], %s1526_s22, %s1526_s22, %s1527_s23  }
 0x222   :  { %1520 = dma.done.wait [#allocation5], 2048  }
 0x223   :  { %1521 = vsyncadd [#allocation5], 4294965248 }
 0x224   :  { %1086 = vsyncpa [#allocation4], 1 }
 0x225   :  { %1087 = vsyncpa [#allocation7], 1 }
 0x226   :  { %1088 = vsyncpa [#allocation5], 1 }

</bundles_post_ra>
